<compile_context>
chip_gen: v7x
topology: tpu7x:2x2x1
jax: 0.10.0
libtpu: 0.0.40
codegen_flags: <defaults>
</compile_context>

<pallas_src>
import jax
import jax.numpy as jnp
from jax.experimental import pallas as pl
from jax.experimental.pallas import tpu as pltpu


def gru_kernel(x_ref, wih_ref, whh_ref, bgi_ref, bhn_ref, wfc_ref, bfc_ref,
               out_ref, gi_ref):
    # x_ref:   (T*B, I)  time-major, batch-padded, flattened in the wrapper
    # wih_ref: (I, 3H)   whh_ref: (H, 3H)          gate order r, z, n (torch)
    # bgi_ref: (1, 3H)   = b_ih + [b_hr, b_hz, 0]  (folded into input projection)
    # bhn_ref: (1, H)    = b_hn                    (must stay inside r*(...))
    # wfc_ref: (C, H)    torch Linear layout       bfc_ref: (1, C)
    # out_ref: (B, C)    gi_ref: (T*B, 3H) VMEM scratch
    TB, _ = x_ref.shape
    H = whh_ref.shape[0]
    B, C = out_ref.shape
    T = TB // B

    # --- Hoisted input projection: one MXU pass for all T steps, parked in VMEM
    #     scratch so it is not a live vreg value across the unrolled recurrence.
    gi_ref[...] = (
        jnp.dot(x_ref[...], wih_ref[...], preferred_element_type=jnp.float32)
        + bgi_ref[...]
    )

    bhn = bhn_ref[...]                                   # (1, H)

    # --- Recurrence, fully unrolled (T is small & static).  gi and W_hh are read
    #     from refs each step (static slices are views; Mosaic streams the tiles).
    h = jnp.zeros((B, H), jnp.float32)
    for t in range(T):
        gi = gi_ref[pl.ds(t * B, B), :]                                  # (B, 3H)
        gh = jnp.dot(h, whh_ref[...], preferred_element_type=jnp.float32)  # (B, 3H)
        r = jax.nn.sigmoid(gi[:, 0:H] + gh[:, 0:H])
        z = jax.nn.sigmoid(gi[:, H:2 * H] + gh[:, H:2 * H])
        n = jnp.tanh(gi[:, 2 * H:3 * H] + r * (gh[:, 2 * H:3 * H] + bhn))
        h = (1.0 - z) * n + z * h

    # --- Classifier head.
    if C == 1:
        # VPU mul + XLU lane-reduce; avoids a 1-column MXU push.
        out = jnp.sum(h * wfc_ref[...], axis=-1, keepdims=True) + bfc_ref[...]
    else:
        # h (B,H) x wfc (C,H) contracting on H (nt-form), no materialized transpose.
        out = jax.lax.dot_general(
            h, wfc_ref[...],
            dimension_numbers=(((1,), (1,)), ((), ())),
            preferred_element_type=jnp.float32,
        ) + bfc_ref[...]
    out_ref[...] = out


def gru_forward(x, params):
    """x: (B, T, I) float32, params in torch layout -> (B, num_classes) float32."""
    w_ih, w_hh, b_ih, b_hh, w_fc, b_fc = params   # torch layouts
    B, T, I = x.shape
    H = w_hh.shape[1]
    C = w_fc.shape[0]

    # Pad batch to a sublane multiple (>= 8); padded rows are sliced off afterwards.
    B_pad = max(8, ((B + 7) // 8) * 8)
    if B_pad != B:
        x = jnp.pad(x, ((0, B_pad - B), (0, 0), (0, 0)))
    # Time-major + flattened in the wrapper (free layout plumbing for XLA) so the
    # kernel never reshapes across the (8,128) tiling.
    x2d = jnp.transpose(x, (1, 0, 2)).reshape(T * B_pad, I)             # (T*B_pad, I)

    wih_t = jnp.transpose(w_ih)                                          # (I, 3H)
    whh_t = jnp.transpose(w_hh)                                          # (H, 3H)
    # Fold b_ih (all gates) + b_hh for r,z into the hoisted projection; keep b_hn out.
    b_gi = (b_ih + jnp.concatenate(
        [b_hh[:2 * H], jnp.zeros((H,), b_hh.dtype)])).reshape(1, 3 * H)
    b_hn = b_hh[2 * H:].reshape(1, H)
    b_fc2 = b_fc.reshape(1, C)

    vmem = pl.BlockSpec(memory_space=pltpu.MemorySpace.VMEM)
    out = pl.pallas_call(
        gru_kernel,
        out_shape=jax.ShapeDtypeStruct((B_pad, C), jnp.float32),
        in_specs=[vmem] * 7,
        out_specs=vmem,
        scratch_shapes=[pltpu.VMEM((T * B_pad, 3 * H), jnp.float32)],
    )(x2d, wih_t, whh_t, b_gi, b_hn, w_fc, b_fc2)
    return out[:B]


def make_params(key, input_size, hidden_size, num_classes):
    """Torch-layout params, uniform(-1/sqrt(H), 1/sqrt(H)) like nn.GRU / nn.Linear."""
    k = 1.0 / jnp.sqrt(jnp.float32(hidden_size))
    ks = jax.random.split(key, 6)
    w_ih = jax.random.uniform(ks[0], (3 * hidden_size, input_size), jnp.float32, -k, k)
    w_hh = jax.random.uniform(ks[1], (3 * hidden_size, hidden_size), jnp.float32, -k, k)
    b_ih = jax.random.uniform(ks[2], (3 * hidden_size,), jnp.float32, -k, k)
    b_hh = jax.random.uniform(ks[3], (3 * hidden_size,), jnp.float32, -k, k)
    w_fc = jax.random.uniform(ks[4], (num_classes, hidden_size), jnp.float32, -k, k)
    b_fc = jax.random.uniform(ks[5], (num_classes,), jnp.float32, -k, k)
    return w_ih, w_hh, b_ih, b_hh, w_fc, b_fc


def gru_reference(x, params):
    """Pure-JAX reference of torch.nn.GRU(batch_first) + Linear, last timestep."""
    w_ih, w_hh, b_ih, b_hh, w_fc, b_fc = params
    B, T, _ = x.shape
    H = w_hh.shape[1]
    h = jnp.zeros((B, H), jnp.float32)
    for t in range(T):
        gi = x[:, t, :] @ w_ih.T + b_ih
        gh = h @ w_hh.T + b_hh
        r = jax.nn.sigmoid(gi[:, :H] + gh[:, :H])
        z = jax.nn.sigmoid(gi[:, H:2 * H] + gh[:, H:2 * H])
        n = jnp.tanh(gi[:, 2 * H:] + r * gh[:, 2 * H:])
        h = (1.0 - z) * n + z * h
    return h @ w_fc.T + b_fc


if __name__ == "__main__":
    input_size, hidden_size, num_classes = 21, 128, 1
    batch, seq = 2, 8

    key = jax.random.PRNGKey(0)
    kx, kp = jax.random.split(key)
    x = jax.random.normal(kx, (batch, seq, input_size), jnp.float32)
    params = make_params(kp, input_size, hidden_size, num_classes)

    out = jax.block_until_ready(jax.jit(gru_forward)(x, params))
    ref = gru_reference(x, params)

    assert out.shape == (batch, num_classes)
    assert jnp.allclose(out, ref, rtol=1e-4, atol=1e-4), (out, ref)
    print("KERNEL_OK")
</pallas_src>

<mosaic_0001>
module attributes {stable_mosaic.version = 11 : i64} {
  func.func @gru_kernel(%arg0: memref<64x21xf32, #tpu.memory_space<vmem>>, %arg1: memref<21x384xf32, #tpu.memory_space<vmem>>, %arg2: memref<128x384xf32, #tpu.memory_space<vmem>>, %arg3: memref<1x384xf32, #tpu.memory_space<vmem>>, %arg4: memref<1x128xf32, #tpu.memory_space<vmem>>, %arg5: memref<1x128xf32, #tpu.memory_space<vmem>>, %arg6: memref<1x1xf32, #tpu.memory_space<vmem>>, %arg7: memref<8x1xf32, #tpu.memory_space<vmem>>, %arg8: memref<64x384xf32, #tpu.memory_space<vmem>>) attributes {dimension_semantics = [], scalar_prefetch = 0 : i64, scratch_operands = 1 : i64, tpu.core_type = #tpu.core_type<tc>} {
    %c0 = arith.constant 0 : index
    %c0_0 = arith.constant 0 : index
    %0 = vector.load %arg0[%c0, %c0_0] : memref<64x21xf32, #tpu.memory_space<vmem>>, vector<64x21xf32>
    %c0_1 = arith.constant 0 : index
    %c0_2 = arith.constant 0 : index
    %1 = vector.load %arg1[%c0_1, %c0_2] : memref<21x384xf32, #tpu.memory_space<vmem>>, vector<21x384xf32>
    %cst = arith.constant dense<0.000000e+00> : vector<64x384xf32>
    %2 = tpu.matmul %0, %1, %cst {dimension_numbers = #tpu.dot_dimension_numbers<[1], [0], [0], [1], [0, 0, 1, 1], [], []>} : vector<64x21xf32>, vector<21x384xf32>, vector<64x384xf32> -> vector<64x384xf32>
    %c0_3 = arith.constant 0 : index
    %c0_4 = arith.constant 0 : index
    %3 = vector.load %arg3[%c0_3, %c0_4] : memref<1x384xf32, #tpu.memory_space<vmem>>, vector<1x384xf32>
    %4 = vector.broadcast %3 : vector<1x384xf32> to vector<64x384xf32>
    %5 = arith.addf %2, %4 : vector<64x384xf32>
    %c0_5 = arith.constant 0 : index
    %c0_6 = arith.constant 0 : index
    %6 = vector.load %arg8[%c0_5, %c0_6] : memref<64x384xf32, #tpu.memory_space<vmem>>, vector<64x384xf32>
    tpu.vector_store %arg8[%c0_5, %c0_6], %5 {strides = array<i32>} : memref<64x384xf32, #tpu.memory_space<vmem>>, vector<64x384xf32>,
    %c0_7 = arith.constant 0 : index
    %c0_8 = arith.constant 0 : index
    %7 = vector.load %arg4[%c0_7, %c0_8] : memref<1x128xf32, #tpu.memory_space<vmem>>, vector<1x128xf32>
    %cst_9 = arith.constant 0.000000e+00 : f32
    %8 = vector.broadcast %cst_9 : f32 to vector<8x128xf32>
    %c0_10 = arith.constant 0 : index
    %c0_11 = arith.constant 0 : index
    %9 = vector.load %arg8[%c0_10, %c0_11] : memref<64x384xf32, #tpu.memory_space<vmem>>, vector<8x384xf32>
    %c0_12 = arith.constant 0 : index
    %c0_13 = arith.constant 0 : index
    %10 = vector.load %arg2[%c0_12, %c0_13] : memref<128x384xf32, #tpu.memory_space<vmem>>, vector<128x384xf32>
    %cst_14 = arith.constant dense<0.000000e+00> : vector<8x384xf32>
    %11 = tpu.matmul %8, %10, %cst_14 {dimension_numbers = #tpu.dot_dimension_numbers<[1], [0], [0], [1], [0, 0, 1, 1], [], []>} : vector<8x128xf32>, vector<128x384xf32>, vector<8x384xf32> -> vector<8x384xf32>
    %12 = vector.extract_strided_slice %9 {offsets = [0, 0], sizes = [8, 128], strides = [1, 1]} : vector<8x384xf32> to vector<8x128xf32>
    %13 = vector.extract_strided_slice %11 {offsets = [0, 0], sizes = [8, 128], strides = [1, 1]} : vector<8x384xf32> to vector<8x128xf32>
    %14 = arith.addf %12, %13 : vector<8x128xf32>
    %15 = arith.negf %14 : vector<8x128xf32>
    %16 = math.exp %15 : vector<8x128xf32>
    %cst_15 = arith.constant 1.000000e+00 : f32
    %17 = vector.broadcast %cst_15 : f32 to vector<8x128xf32>
    %18 = arith.addf %17, %16 : vector<8x128xf32>
    %19 = arith.divf %17, %18 : vector<8x128xf32>
    %20 = vector.extract_strided_slice %9 {offsets = [0, 128], sizes = [8, 128], strides = [1, 1]} : vector<8x384xf32> to vector<8x128xf32>
    %21 = vector.extract_strided_slice %11 {offsets = [0, 128], sizes = [8, 128], strides = [1, 1]} : vector<8x384xf32> to vector<8x128xf32>
    %22 = arith.addf %20, %21 : vector<8x128xf32>
    %23 = arith.negf %22 : vector<8x128xf32>
    %24 = math.exp %23 : vector<8x128xf32>
    %cst_16 = arith.constant 1.000000e+00 : f32
    %25 = vector.broadcast %cst_16 : f32 to vector<8x128xf32>
    %26 = arith.addf %25, %24 : vector<8x128xf32>
    %27 = arith.divf %25, %26 : vector<8x128xf32>
    %28 = vector.extract_strided_slice %9 {offsets = [0, 256], sizes = [8, 128], strides = [1, 1]} : vector<8x384xf32> to vector<8x128xf32>
    %29 = vector.extract_strided_slice %11 {offsets = [0, 256], sizes = [8, 128], strides = [1, 1]} : vector<8x384xf32> to vector<8x128xf32>
    %30 = vector.broadcast %7 : vector<1x128xf32> to vector<8x128xf32>
    %31 = arith.addf %29, %30 : vector<8x128xf32>
    %32 = arith.mulf %19, %31 : vector<8x128xf32>
    %33 = arith.addf %28, %32 : vector<8x128xf32>
    %34 = math.tanh %33 : vector<8x128xf32>
    %cst_17 = arith.constant 1.000000e+00 : f32
    %35 = vector.broadcast %cst_17 : f32 to vector<8x128xf32>
    %36 = arith.subf %35, %27 : vector<8x128xf32>
    %37 = arith.mulf %36, %34 : vector<8x128xf32>
    %38 = arith.mulf %27, %8 : vector<8x128xf32>
    %39 = arith.addf %37, %38 : vector<8x128xf32>
    %c8 = arith.constant 8 : index
    %c0_18 = arith.constant 0 : index
    %40 = vector.load %arg8[%c8, %c0_18] : memref<64x384xf32, #tpu.memory_space<vmem>>, vector<8x384xf32>
    %c0_19 = arith.constant 0 : index
    %c0_20 = arith.constant 0 : index
    %41 = vector.load %arg2[%c0_19, %c0_20] : memref<128x384xf32, #tpu.memory_space<vmem>>, vector<128x384xf32>
    %cst_21 = arith.constant dense<0.000000e+00> : vector<8x384xf32>
    %42 = tpu.matmul %39, %41, %cst_21 {dimension_numbers = #tpu.dot_dimension_numbers<[1], [0], [0], [1], [0, 0, 1, 1], [], []>} : vector<8x128xf32>, vector<128x384xf32>, vector<8x384xf32> -> vector<8x384xf32>
    %43 = vector.extract_strided_slice %40 {offsets = [0, 0], sizes = [8, 128], strides = [1, 1]} : vector<8x384xf32> to vector<8x128xf32>
    %44 = vector.extract_strided_slice %42 {offsets = [0, 0], sizes = [8, 128], strides = [1, 1]} : vector<8x384xf32> to vector<8x128xf32>
    %45 = arith.addf %43, %44 : vector<8x128xf32>
    %46 = arith.negf %45 : vector<8x128xf32>
    %47 = math.exp %46 : vector<8x128xf32>
    %cst_22 = arith.constant 1.000000e+00 : f32
    %48 = vector.broadcast %cst_22 : f32 to vector<8x128xf32>
    %49 = arith.addf %48, %47 : vector<8x128xf32>
    %50 = arith.divf %48, %49 : vector<8x128xf32>
    %51 = vector.extract_strided_slice %40 {offsets = [0, 128], sizes = [8, 128], strides = [1, 1]} : vector<8x384xf32> to vector<8x128xf32>
    %52 = vector.extract_strided_slice %42 {offsets = [0, 128], sizes = [8, 128], strides = [1, 1]} : vector<8x384xf32> to vector<8x128xf32>
    %53 = arith.addf %51, %52 : vector<8x128xf32>
    %54 = arith.negf %53 : vector<8x128xf32>
    %55 = math.exp %54 : vector<8x128xf32>
    %cst_23 = arith.constant 1.000000e+00 : f32
    %56 = vector.broadcast %cst_23 : f32 to vector<8x128xf32>
    %57 = arith.addf %56, %55 : vector<8x128xf32>
    %58 = arith.divf %56, %57 : vector<8x128xf32>
    %59 = vector.extract_strided_slice %40 {offsets = [0, 256], sizes = [8, 128], strides = [1, 1]} : vector<8x384xf32> to vector<8x128xf32>
    %60 = vector.extract_strided_slice %42 {offsets = [0, 256], sizes = [8, 128], strides = [1, 1]} : vector<8x384xf32> to vector<8x128xf32>
    %61 = vector.broadcast %7 : vector<1x128xf32> to vector<8x128xf32>
    %62 = arith.addf %60, %61 : vector<8x128xf32>
    %63 = arith.mulf %50, %62 : vector<8x128xf32>
    %64 = arith.addf %59, %63 : vector<8x128xf32>
    %65 = math.tanh %64 : vector<8x128xf32>
    %cst_24 = arith.constant 1.000000e+00 : f32
    %66 = vector.broadcast %cst_24 : f32 to vector<8x128xf32>
    %67 = arith.subf %66, %58 : vector<8x128xf32>
    %68 = arith.mulf %67, %65 : vector<8x128xf32>
    %69 = arith.mulf %58, %39 : vector<8x128xf32>
    %70 = arith.addf %68, %69 : vector<8x128xf32>
    %c16 = arith.constant 16 : index
    %c0_25 = arith.constant 0 : index
    %71 = vector.load %arg8[%c16, %c0_25] : memref<64x384xf32, #tpu.memory_space<vmem>>, vector<8x384xf32>
    %c0_26 = arith.constant 0 : index
    %c0_27 = arith.constant 0 : index
    %72 = vector.load %arg2[%c0_26, %c0_27] : memref<128x384xf32, #tpu.memory_space<vmem>>, vector<128x384xf32>
    %cst_28 = arith.constant dense<0.000000e+00> : vector<8x384xf32>
    %73 = tpu.matmul %70, %72, %cst_28 {dimension_numbers = #tpu.dot_dimension_numbers<[1], [0], [0], [1], [0, 0, 1, 1], [], []>} : vector<8x128xf32>, vector<128x384xf32>, vector<8x384xf32> -> vector<8x384xf32>
    %74 = vector.extract_strided_slice %71 {offsets = [0, 0], sizes = [8, 128], strides = [1, 1]} : vector<8x384xf32> to vector<8x128xf32>
    %75 = vector.extract_strided_slice %73 {offsets = [0, 0], sizes = [8, 128], strides = [1, 1]} : vector<8x384xf32> to vector<8x128xf32>
    %76 = arith.addf %74, %75 : vector<8x128xf32>
    %77 = arith.negf %76 : vector<8x128xf32>
    %78 = math.exp %77 : vector<8x128xf32>
    %cst_29 = arith.constant 1.000000e+00 : f32
    %79 = vector.broadcast %cst_29 : f32 to vector<8x128xf32>
    %80 = arith.addf %79, %78 : vector<8x128xf32>
    %81 = arith.divf %79, %80 : vector<8x128xf32>
    %82 = vector.extract_strided_slice %71 {offsets = [0, 128], sizes = [8, 128], strides = [1, 1]} : vector<8x384xf32> to vector<8x128xf32>
    %83 = vector.extract_strided_slice %73 {offsets = [0, 128], sizes = [8, 128], strides = [1, 1]} : vector<8x384xf32> to vector<8x128xf32>
    %84 = arith.addf %82, %83 : vector<8x128xf32>
    %85 = arith.negf %84 : vector<8x128xf32>
    %86 = math.exp %85 : vector<8x128xf32>
    %cst_30 = arith.constant 1.000000e+00 : f32
    %87 = vector.broadcast %cst_30 : f32 to vector<8x128xf32>
    %88 = arith.addf %87, %86 : vector<8x128xf32>
    %89 = arith.divf %87, %88 : vector<8x128xf32>
    %90 = vector.extract_strided_slice %71 {offsets = [0, 256], sizes = [8, 128], strides = [1, 1]} : vector<8x384xf32> to vector<8x128xf32>
    %91 = vector.extract_strided_slice %73 {offsets = [0, 256], sizes = [8, 128], strides = [1, 1]} : vector<8x384xf32> to vector<8x128xf32>
    %92 = vector.broadcast %7 : vector<1x128xf32> to vector<8x128xf32>
    %93 = arith.addf %91, %92 : vector<8x128xf32>
    %94 = arith.mulf %81, %93 : vector<8x128xf32>
    %95 = arith.addf %90, %94 : vector<8x128xf32>
    %96 = math.tanh %95 : vector<8x128xf32>
    %cst_31 = arith.constant 1.000000e+00 : f32
    %97 = vector.broadcast %cst_31 : f32 to vector<8x128xf32>
    %98 = arith.subf %97, %89 : vector<8x128xf32>
    %99 = arith.mulf %98, %96 : vector<8x128xf32>
    %100 = arith.mulf %89, %70 : vector<8x128xf32>
    %101 = arith.addf %99, %100 : vector<8x128xf32>
    %c24 = arith.constant 24 : index
    %c0_32 = arith.constant 0 : index
    %102 = vector.load %arg8[%c24, %c0_32] : memref<64x384xf32, #tpu.memory_space<vmem>>, vector<8x384xf32>
    %c0_33 = arith.constant 0 : index
    %c0_34 = arith.constant 0 : index
    %103 = vector.load %arg2[%c0_33, %c0_34] : memref<128x384xf32, #tpu.memory_space<vmem>>, vector<128x384xf32>
    %cst_35 = arith.constant dense<0.000000e+00> : vector<8x384xf32>
    %104 = tpu.matmul %101, %103, %cst_35 {dimension_numbers = #tpu.dot_dimension_numbers<[1], [0], [0], [1], [0, 0, 1, 1], [], []>} : vector<8x128xf32>, vector<128x384xf32>, vector<8x384xf32> -> vector<8x384xf32>
    %105 = vector.extract_strided_slice %102 {offsets = [0, 0], sizes = [8, 128], strides = [1, 1]} : vector<8x384xf32> to vector<8x128xf32>
    %106 = vector.extract_strided_slice %104 {offsets = [0, 0], sizes = [8, 128], strides = [1, 1]} : vector<8x384xf32> to vector<8x128xf32>
    %107 = arith.addf %105, %106 : vector<8x128xf32>
    %108 = arith.negf %107 : vector<8x128xf32>
    %109 = math.exp %108 : vector<8x128xf32>
    %cst_36 = arith.constant 1.000000e+00 : f32
    %110 = vector.broadcast %cst_36 : f32 to vector<8x128xf32>
    %111 = arith.addf %110, %109 : vector<8x128xf32>
    %112 = arith.divf %110, %111 : vector<8x128xf32>
    %113 = vector.extract_strided_slice %102 {offsets = [0, 128], sizes = [8, 128], strides = [1, 1]} : vector<8x384xf32> to vector<8x128xf32>
    %114 = vector.extract_strided_slice %104 {offsets = [0, 128], sizes = [8, 128], strides = [1, 1]} : vector<8x384xf32> to vector<8x128xf32>
    %115 = arith.addf %113, %114 : vector<8x128xf32>
    %116 = arith.negf %115 : vector<8x128xf32>
    %117 = math.exp %116 : vector<8x128xf32>
    %cst_37 = arith.constant 1.000000e+00 : f32
    %118 = vector.broadcast %cst_37 : f32 to vector<8x128xf32>
    %119 = arith.addf %118, %117 : vector<8x128xf32>
    %120 = arith.divf %118, %119 : vector<8x128xf32>
    %121 = vector.extract_strided_slice %102 {offsets = [0, 256], sizes = [8, 128], strides = [1, 1]} : vector<8x384xf32> to vector<8x128xf32>
    %122 = vector.extract_strided_slice %104 {offsets = [0, 256], sizes = [8, 128], strides = [1, 1]} : vector<8x384xf32> to vector<8x128xf32>
    %123 = vector.broadcast %7 : vector<1x128xf32> to vector<8x128xf32>
    %124 = arith.addf %122, %123 : vector<8x128xf32>
    %125 = arith.mulf %112, %124 : vector<8x128xf32>
    %126 = arith.addf %121, %125 : vector<8x128xf32>
    %127 = math.tanh %126 : vector<8x128xf32>
    %cst_38 = arith.constant 1.000000e+00 : f32
    %128 = vector.broadcast %cst_38 : f32 to vector<8x128xf32>
    %129 = arith.subf %128, %120 : vector<8x128xf32>
    %130 = arith.mulf %129, %127 : vector<8x128xf32>
    %131 = arith.mulf %120, %101 : vector<8x128xf32>
    %132 = arith.addf %130, %131 : vector<8x128xf32>
    %c32 = arith.constant 32 : index
    %c0_39 = arith.constant 0 : index
    %133 = vector.load %arg8[%c32, %c0_39] : memref<64x384xf32, #tpu.memory_space<vmem>>, vector<8x384xf32>
    %c0_40 = arith.constant 0 : index
    %c0_41 = arith.constant 0 : index
    %134 = vector.load %arg2[%c0_40, %c0_41] : memref<128x384xf32, #tpu.memory_space<vmem>>, vector<128x384xf32>
    %cst_42 = arith.constant dense<0.000000e+00> : vector<8x384xf32>
    %135 = tpu.matmul %132, %134, %cst_42 {dimension_numbers = #tpu.dot_dimension_numbers<[1], [0], [0], [1], [0, 0, 1, 1], [], []>} : vector<8x128xf32>, vector<128x384xf32>, vector<8x384xf32> -> vector<8x384xf32>
    %136 = vector.extract_strided_slice %133 {offsets = [0, 0], sizes = [8, 128], strides = [1, 1]} : vector<8x384xf32> to vector<8x128xf32>
    %137 = vector.extract_strided_slice %135 {offsets = [0, 0], sizes = [8, 128], strides = [1, 1]} : vector<8x384xf32> to vector<8x128xf32>
    %138 = arith.addf %136, %137 : vector<8x128xf32>
    %139 = arith.negf %138 : vector<8x128xf32>
    %140 = math.exp %139 : vector<8x128xf32>
    %cst_43 = arith.constant 1.000000e+00 : f32
    %141 = vector.broadcast %cst_43 : f32 to vector<8x128xf32>
    %142 = arith.addf %141, %140 : vector<8x128xf32>
    %143 = arith.divf %141, %142 : vector<8x128xf32>
    %144 = vector.extract_strided_slice %133 {offsets = [0, 128], sizes = [8, 128], strides = [1, 1]} : vector<8x384xf32> to vector<8x128xf32>
    %145 = vector.extract_strided_slice %135 {offsets = [0, 128], sizes = [8, 128], strides = [1, 1]} : vector<8x384xf32> to vector<8x128xf32>
    %146 = arith.addf %144, %145 : vector<8x128xf32>
    %147 = arith.negf %146 : vector<8x128xf32>
    %148 = math.exp %147 : vector<8x128xf32>
    %cst_44 = arith.constant 1.000000e+00 : f32
    %149 = vector.broadcast %cst_44 : f32 to vector<8x128xf32>
    %150 = arith.addf %149, %148 : vector<8x128xf32>
    %151 = arith.divf %149, %150 : vector<8x128xf32>
    %152 = vector.extract_strided_slice %133 {offsets = [0, 256], sizes = [8, 128], strides = [1, 1]} : vector<8x384xf32> to vector<8x128xf32>
    %153 = vector.extract_strided_slice %135 {offsets = [0, 256], sizes = [8, 128], strides = [1, 1]} : vector<8x384xf32> to vector<8x128xf32>
    %154 = vector.broadcast %7 : vector<1x128xf32> to vector<8x128xf32>
    %155 = arith.addf %153, %154 : vector<8x128xf32>
    %156 = arith.mulf %143, %155 : vector<8x128xf32>
    %157 = arith.addf %152, %156 : vector<8x128xf32>
    %158 = math.tanh %157 : vector<8x128xf32>
    %cst_45 = arith.constant 1.000000e+00 : f32
    %159 = vector.broadcast %cst_45 : f32 to vector<8x128xf32>
    %160 = arith.subf %159, %151 : vector<8x128xf32>
    %161 = arith.mulf %160, %158 : vector<8x128xf32>
    %162 = arith.mulf %151, %132 : vector<8x128xf32>
    %163 = arith.addf %161, %162 : vector<8x128xf32>
    %c40 = arith.constant 40 : index
    %c0_46 = arith.constant 0 : index
    %164 = vector.load %arg8[%c40, %c0_46] : memref<64x384xf32, #tpu.memory_space<vmem>>, vector<8x384xf32>
    %c0_47 = arith.constant 0 : index
    %c0_48 = arith.constant 0 : index
    %165 = vector.load %arg2[%c0_47, %c0_48] : memref<128x384xf32, #tpu.memory_space<vmem>>, vector<128x384xf32>
    %cst_49 = arith.constant dense<0.000000e+00> : vector<8x384xf32>
    %166 = tpu.matmul %163, %165, %cst_49 {dimension_numbers = #tpu.dot_dimension_numbers<[1], [0], [0], [1], [0, 0, 1, 1], [], []>} : vector<8x128xf32>, vector<128x384xf32>, vector<8x384xf32> -> vector<8x384xf32>
    %167 = vector.extract_strided_slice %164 {offsets = [0, 0], sizes = [8, 128], strides = [1, 1]} : vector<8x384xf32> to vector<8x128xf32>
    %168 = vector.extract_strided_slice %166 {offsets = [0, 0], sizes = [8, 128], strides = [1, 1]} : vector<8x384xf32> to vector<8x128xf32>
    %169 = arith.addf %167, %168 : vector<8x128xf32>
    %170 = arith.negf %169 : vector<8x128xf32>
    %171 = math.exp %170 : vector<8x128xf32>
    %cst_50 = arith.constant 1.000000e+00 : f32
    %172 = vector.broadcast %cst_50 : f32 to vector<8x128xf32>
    %173 = arith.addf %172, %171 : vector<8x128xf32>
    %174 = arith.divf %172, %173 : vector<8x128xf32>
    %175 = vector.extract_strided_slice %164 {offsets = [0, 128], sizes = [8, 128], strides = [1, 1]} : vector<8x384xf32> to vector<8x128xf32>
    %176 = vector.extract_strided_slice %166 {offsets = [0, 128], sizes = [8, 128], strides = [1, 1]} : vector<8x384xf32> to vector<8x128xf32>
    %177 = arith.addf %175, %176 : vector<8x128xf32>
    %178 = arith.negf %177 : vector<8x128xf32>
    %179 = math.exp %178 : vector<8x128xf32>
    %cst_51 = arith.constant 1.000000e+00 : f32
    %180 = vector.broadcast %cst_51 : f32 to vector<8x128xf32>
    %181 = arith.addf %180, %179 : vector<8x128xf32>
    %182 = arith.divf %180, %181 : vector<8x128xf32>
    %183 = vector.extract_strided_slice %164 {offsets = [0, 256], sizes = [8, 128], strides = [1, 1]} : vector<8x384xf32> to vector<8x128xf32>
    %184 = vector.extract_strided_slice %166 {offsets = [0, 256], sizes = [8, 128], strides = [1, 1]} : vector<8x384xf32> to vector<8x128xf32>
    %185 = vector.broadcast %7 : vector<1x128xf32> to vector<8x128xf32>
    %186 = arith.addf %184, %185 : vector<8x128xf32>
    %187 = arith.mulf %174, %186 : vector<8x128xf32>
    %188 = arith.addf %183, %187 : vector<8x128xf32>
    %189 = math.tanh %188 : vector<8x128xf32>
    %cst_52 = arith.constant 1.000000e+00 : f32
    %190 = vector.broadcast %cst_52 : f32 to vector<8x128xf32>
    %191 = arith.subf %190, %182 : vector<8x128xf32>
    %192 = arith.mulf %191, %189 : vector<8x128xf32>
    %193 = arith.mulf %182, %163 : vector<8x128xf32>
    %194 = arith.addf %192, %193 : vector<8x128xf32>
    %c48 = arith.constant 48 : index
    %c0_53 = arith.constant 0 : index
    %195 = vector.load %arg8[%c48, %c0_53] : memref<64x384xf32, #tpu.memory_space<vmem>>, vector<8x384xf32>
    %c0_54 = arith.constant 0 : index
    %c0_55 = arith.constant 0 : index
    %196 = vector.load %arg2[%c0_54, %c0_55] : memref<128x384xf32, #tpu.memory_space<vmem>>, vector<128x384xf32>
    %cst_56 = arith.constant dense<0.000000e+00> : vector<8x384xf32>
    %197 = tpu.matmul %194, %196, %cst_56 {dimension_numbers = #tpu.dot_dimension_numbers<[1], [0], [0], [1], [0, 0, 1, 1], [], []>} : vector<8x128xf32>, vector<128x384xf32>, vector<8x384xf32> -> vector<8x384xf32>
    %198 = vector.extract_strided_slice %195 {offsets = [0, 0], sizes = [8, 128], strides = [1, 1]} : vector<8x384xf32> to vector<8x128xf32>
    %199 = vector.extract_strided_slice %197 {offsets = [0, 0], sizes = [8, 128], strides = [1, 1]} : vector<8x384xf32> to vector<8x128xf32>
    %200 = arith.addf %198, %199 : vector<8x128xf32>
    %201 = arith.negf %200 : vector<8x128xf32>
    %202 = math.exp %201 : vector<8x128xf32>
    %cst_57 = arith.constant 1.000000e+00 : f32
    %203 = vector.broadcast %cst_57 : f32 to vector<8x128xf32>
    %204 = arith.addf %203, %202 : vector<8x128xf32>
    %205 = arith.divf %203, %204 : vector<8x128xf32>
    %206 = vector.extract_strided_slice %195 {offsets = [0, 128], sizes = [8, 128], strides = [1, 1]} : vector<8x384xf32> to vector<8x128xf32>
    %207 = vector.extract_strided_slice %197 {offsets = [0, 128], sizes = [8, 128], strides = [1, 1]} : vector<8x384xf32> to vector<8x128xf32>
    %208 = arith.addf %206, %207 : vector<8x128xf32>
    %209 = arith.negf %208 : vector<8x128xf32>
    %210 = math.exp %209 : vector<8x128xf32>
    %cst_58 = arith.constant 1.000000e+00 : f32
    %211 = vector.broadcast %cst_58 : f32 to vector<8x128xf32>
    %212 = arith.addf %211, %210 : vector<8x128xf32>
    %213 = arith.divf %211, %212 : vector<8x128xf32>
    %214 = vector.extract_strided_slice %195 {offsets = [0, 256], sizes = [8, 128], strides = [1, 1]} : vector<8x384xf32> to vector<8x128xf32>
    %215 = vector.extract_strided_slice %197 {offsets = [0, 256], sizes = [8, 128], strides = [1, 1]} : vector<8x384xf32> to vector<8x128xf32>
    %216 = vector.broadcast %7 : vector<1x128xf32> to vector<8x128xf32>
    %217 = arith.addf %215, %216 : vector<8x128xf32>
    %218 = arith.mulf %205, %217 : vector<8x128xf32>
    %219 = arith.addf %214, %218 : vector<8x128xf32>
    %220 = math.tanh %219 : vector<8x128xf32>
    %cst_59 = arith.constant 1.000000e+00 : f32
    %221 = vector.broadcast %cst_59 : f32 to vector<8x128xf32>
    %222 = arith.subf %221, %213 : vector<8x128xf32>
    %223 = arith.mulf %222, %220 : vector<8x128xf32>
    %224 = arith.mulf %213, %194 : vector<8x128xf32>
    %225 = arith.addf %223, %224 : vector<8x128xf32>
    %c56 = arith.constant 56 : index
    %c0_60 = arith.constant 0 : index
    %226 = vector.load %arg8[%c56, %c0_60] : memref<64x384xf32, #tpu.memory_space<vmem>>, vector<8x384xf32>
    %c0_61 = arith.constant 0 : index
    %c0_62 = arith.constant 0 : index
    %227 = vector.load %arg2[%c0_61, %c0_62] : memref<128x384xf32, #tpu.memory_space<vmem>>, vector<128x384xf32>
    %cst_63 = arith.constant dense<0.000000e+00> : vector<8x384xf32>
    %228 = tpu.matmul %225, %227, %cst_63 {dimension_numbers = #tpu.dot_dimension_numbers<[1], [0], [0], [1], [0, 0, 1, 1], [], []>} : vector<8x128xf32>, vector<128x384xf32>, vector<8x384xf32> -> vector<8x384xf32>
    %229 = vector.extract_strided_slice %226 {offsets = [0, 0], sizes = [8, 128], strides = [1, 1]} : vector<8x384xf32> to vector<8x128xf32>
    %230 = vector.extract_strided_slice %228 {offsets = [0, 0], sizes = [8, 128], strides = [1, 1]} : vector<8x384xf32> to vector<8x128xf32>
    %231 = arith.addf %229, %230 : vector<8x128xf32>
    %232 = arith.negf %231 : vector<8x128xf32>
    %233 = math.exp %232 : vector<8x128xf32>
    %cst_64 = arith.constant 1.000000e+00 : f32
    %234 = vector.broadcast %cst_64 : f32 to vector<8x128xf32>
    %235 = arith.addf %234, %233 : vector<8x128xf32>
    %236 = arith.divf %234, %235 : vector<8x128xf32>
    %237 = vector.extract_strided_slice %226 {offsets = [0, 128], sizes = [8, 128], strides = [1, 1]} : vector<8x384xf32> to vector<8x128xf32>
    %238 = vector.extract_strided_slice %228 {offsets = [0, 128], sizes = [8, 128], strides = [1, 1]} : vector<8x384xf32> to vector<8x128xf32>
    %239 = arith.addf %237, %238 : vector<8x128xf32>
    %240 = arith.negf %239 : vector<8x128xf32>
    %241 = math.exp %240 : vector<8x128xf32>
    %cst_65 = arith.constant 1.000000e+00 : f32
    %242 = vector.broadcast %cst_65 : f32 to vector<8x128xf32>
    %243 = arith.addf %242, %241 : vector<8x128xf32>
    %244 = arith.divf %242, %243 : vector<8x128xf32>
    %245 = vector.extract_strided_slice %226 {offsets = [0, 256], sizes = [8, 128], strides = [1, 1]} : vector<8x384xf32> to vector<8x128xf32>
    %246 = vector.extract_strided_slice %228 {offsets = [0, 256], sizes = [8, 128], strides = [1, 1]} : vector<8x384xf32> to vector<8x128xf32>
    %247 = vector.broadcast %7 : vector<1x128xf32> to vector<8x128xf32>
    %248 = arith.addf %246, %247 : vector<8x128xf32>
    %249 = arith.mulf %236, %248 : vector<8x128xf32>
    %250 = arith.addf %245, %249 : vector<8x128xf32>
    %251 = math.tanh %250 : vector<8x128xf32>
    %cst_66 = arith.constant 1.000000e+00 : f32
    %252 = vector.broadcast %cst_66 : f32 to vector<8x128xf32>
    %253 = arith.subf %252, %244 : vector<8x128xf32>
    %254 = arith.mulf %253, %251 : vector<8x128xf32>
    %255 = arith.mulf %244, %225 : vector<8x128xf32>
    %256 = arith.addf %254, %255 : vector<8x128xf32>
    %c0_67 = arith.constant 0 : index
    %c0_68 = arith.constant 0 : index
    %257 = vector.load %arg5[%c0_67, %c0_68] : memref<1x128xf32, #tpu.memory_space<vmem>>, vector<1x128xf32>
    %258 = vector.broadcast %257 : vector<1x128xf32> to vector<8x128xf32>
    %259 = arith.mulf %256, %258 : vector<8x128xf32>
    %cst_69 = arith.constant dense<0.000000e+00> : vector<8xf32>
    %260 = vector.multi_reduction <add>, %259, %cst_69 [1] : vector<8x128xf32> to vector<8xf32>
    %261 = vector.shape_cast %260 : vector<8xf32> to vector<8x1xf32>
    %c0_70 = arith.constant 0 : index
    %c0_71 = arith.constant 0 : index
    %262 = vector.load %arg6[%c0_70, %c0_71] : memref<1x1xf32, #tpu.memory_space<vmem>>, vector<1x1xf32>
    %263 = vector.broadcast %262 : vector<1x1xf32> to vector<8x1xf32>
    %264 = arith.addf %261, %263 : vector<8x1xf32>
    %c0_72 = arith.constant 0 : index
    %c0_73 = arith.constant 0 : index
    %265 = vector.load %arg7[%c0_72, %c0_73] : memref<8x1xf32, #tpu.memory_space<vmem>>, vector<8x1xf32>
    tpu.vector_store %arg7[%c0_72, %c0_73], %264 {strides = array<i32>} : memref<8x1xf32, #tpu.memory_space<vmem>>, vector<8x1xf32>,
    return
  }
}

</mosaic_0001>

<bundles_post_ra>
// kernel: gru_forward.1
= control target key start
LH: loop header
LB: loop body
LE: loop exit
PB: predicated region body
PF: predicated region fallthrough
CT: control target
= control target key end

     0   :  { %v2800_v3 = vmov 0.0   ;;  %vm87_vm0 = vcmask 1044480   ;;  %vm62_vm1 = vcmask 171008   ;;  %v2801_v51 = vmov 0.0|0.0   ;;  %s3462_s1 = inlined_call_operand.vmem [shape: f32[21,384], index: 1, kind: input, shape index: {}]   ;;  %s3463_s0 = inlined_call_operand.vmem [shape: f32[64,21], index: 0, kind: input, shape index: {}]   ;;  %s3464_s2 = inlined_call_operand.vmem [shape: f32[128,384], index: 2, kind: input, shape index: {}]   ;;  %s3465_s3 = inlined_call_operand.vmem [shape: f32[1,384], index: 3, kind: input, shape index: {}]   ;;  %s3466_s4 = inlined_call_operand.vmem [shape: f32[1,128], index: 4, kind: input, shape index: {}]   ;;  %s3467_s6 = inlined_call_operand.<no memory space> [shape: f32[1,1], index: 6, kind: input, shape index: {}]   ;;  %s3468_s5 = inlined_call_operand.vmem [shape: f32[1,128], index: 5, kind: input, shape index: {}]   ;;  %s3469_s7 = inlined_call_operand.vmem [shape: f32[8,1], index: 7, kind: output, shape index: {}]  }
   0x1   :  { %v37_v0 = vld [vmem:[%s3462_s1 + $0x8] sm:$0xff]  ;;  %v40_v1 = vld [vmem:[%s3462_s1 + $0x20] sm:$0xff]  ;;  %161 = vmatprep.mubr.f32.mxu0 %v2800_v3  ;;  %v39_v5 = vld [vmem:[%s3462_s1 + $0x18] sm:$0xff]  ;;  %vm2802_vm2 = vmmov 0   ;;  %vm1740_vm3 = vcmask 7168  }
   0x2   :  { %v36_v2 = vld [vmem:[%s3462_s1] sm:$0xff]  ;;  %v2229_v4 = vpack.c.bf16 %v40_v1, %v37_v0  ;;  %v43_v6 = vld [vmem:[%s3462_s1 + $0x38] sm:$0x1f]  ;;  %v344_v9 = vld [vmem:[%s3464_s2 + $0x8] sm:$0xff] }
   0x3   :  { %v2231_v7 = vpack.c.bf16 %v39_v5, %v36_v2  ;;  %v28_v8 = vld [vmem:[%s3463_s0] sm:$0xff]  ;;  %v346_v12 = vld [vmem:[%s3464_s2 + $0x18] sm:$0xff]  ;;  %v353_v14 = vld [vmem:[%s3464_s2 + $0x50] sm:$0xff] }
   0x4   :  { %v347_v10 = vld [vmem:[%s3464_s2 + $0x20] sm:$0xff]  ;;  %2230 = vmatprep.subr.bf16.mxu0 %v2229_v4  ;;  %1937 = vmatprep.mubr.msk.f32.mxu1 %vm62_vm1, %v28_v8  ;;  %v350_v13 = vld [vmem:[%s3464_s2 + $0x38] sm:$0xff]  ;;  %v42_v15 = vld [vmem:[%s3462_s1 + $0x30] sm:$0x1f] }
   0x5   :  { %v343_v11 = vld [vmem:[%s3464_s2] sm:$0xff]  ;;  %2232 = vmatpush1.bf16.msra.mxu0 %v2231_v7  ;;  %v2885_v16 = vpack.c.bf16 %v347_v10, %v344_v9  ;;  %v2889_v18 = vpack.c.bf16 %v353_v14, %v350_v13  ;;  %v349_v19 = vld [vmem:[%s3464_s2 + $0x30] sm:$0xff]  ;;  %v352_v20 = vld [vmem:[%s3464_s2 + $0x48] sm:$0xff] }
   0x6   :  { %1746 = vmatprep.subr.msk.mxu0 %vm87_vm0, %v43_v6  ;;  %v2887_v17 = vpack.c.bf16 %v346_v12, %v343_v11  ;;  %v356_v21 = vld [vmem:[%s3464_s2 + $0x68] sm:$0xff]  ;;  %v359_v22 = vld [vmem:[%s3464_s2 + $0x80] sm:$0xff]  ;;  %v2911_v24 = vpack.c.bf16 %v352_v20, %v349_v19  ;;  %v38_v25 = vld [vmem:[%s3462_s1 + $0x10] sm:$0xff] }
   0x7   :  { %v29_v23 = vld [vmem:[%s3463_s0 + $0x8] sm:$0xff]  ;;  %v2917_v26 = vpack.c.bf16 %v359_v22, %v356_v21  ;;  %v355_v27 = vld [vmem:[%s3464_s2 + $0x60] sm:$0xff]  ;;  %v358_v28 = vld [vmem:[%s3464_s2 + $0x78] sm:$0xff] }
   0x8   :  { %v41_v29 = vld [vmem:[%s3462_s1 + $0x28] sm:$0xff]  ;;  %v362_v30 = vld [vmem:[%s3464_s2 + $0x98] sm:$0xff]  ;;  %v365_v31 = vld [vmem:[%s3464_s2 + $0xb0] sm:$0xff]  ;;  %v2940_v34 = vpack.c.bf16 %v358_v28, %v355_v27 }
   0x9   :  { %1747 = vmatpush1.msk.msra.mxu0 %vm87_vm0, %v42_v15  ;;  %v2233_v32 = vpack.c.bf16 %v41_v29, %v38_v25  ;;  %v30_v33 = vld [vmem:[%s3463_s0 + $0x10] sm:$0xff]  ;;  %v44_v35 = vld [vmem:[%s3462_s1 + $0x40] sm:$0x1f]  ;;  %v2946_v36 = vpack.c.bf16 %v365_v31, %v362_v30  ;;  %v364_v38 = vld [vmem:[%s3464_s2 + $0xa8] sm:$0xff] }
   0xa   :  { %1748 = vmatmul.mubr.msk.f32.vlgmr.msra.gmra.mrb[0].mxu0 %vm62_vm1, %v28_v8  ;;  %2238 = vmatprep.subr.bf16.mxu0 %v2885_v16  ;;  %v361_v37 = vld [vmem:[%s3464_s2 + $0x90] sm:$0xff]  ;;  %v368_v39 = vld [vmem:[%s3464_s2 + $0xc8] sm:$0xff]  ;;  %v371_v40 = vld [vmem:[%s3464_s2 + $0xe0] sm:$0xff] }
   0xb   :  { %2240 = vmatpush1.bf16.msra.mxu0 %v2887_v17  ;;  %167 = vmatprep.mubr.f32.mxu0 %v2800_v3  ;;  %v345_v41 = vld [vmem:[%s3464_s2 + $0x10] sm:$0xff]  ;;  %v348_v42 = vld [vmem:[%s3464_s2 + $0x28] sm:$0xff]  ;;  %v31_v43 = vld [vmem:[%s3463_s0 + $0x18] sm:$0xff]  ;;  %v2973_v44 = vpack.c.bf16 %v364_v38, %v361_v37  ;;  %v2976_v45 = vpack.c.bf16 %v371_v40, %v368_v39  ;;  %v47_v38 = vlaneseq }
   0xc   :  { %2242 = vmatprep.subr.bf16.mxu0 %v2889_v18  ;;  %2234 = vmatprep.subr.bf16.mxu1 %v2233_v32  ;;  %v367_v46 = vld [vmem:[%s3464_s2 + $0xc0] sm:$0xff]  ;;  %v370_v47 = vld [vmem:[%s3464_s2 + $0xd8] sm:$0xff]  ;;  %v377_v49 = vld [vmem:[%s3464_s2 + $0x110] sm:$0xff]  ;;  %v2991_v50 = vpack.c.bf16 %v348_v42, %v345_v41 }
   0xd   :  { %2236 = vmatpush3.bf16.msra.mxu1 %v2233_v32  ;;  %v374_v48 = vld [vmem:[%s3464_s2 + $0xf8] sm:$0xff]  ;;  %v351_v52 = vld [vmem:[%s3464_s2 + $0x40] sm:$0xff]  ;;  %v3006_v55 = vpack.c.bf16 %v370_v47, %v367_v46  ;;  %v373_v57 = vld [vmem:[%s3464_s2 + $0xf0] sm:$0xff]  ;;  %v48_v39 = vshrl.u32 %v47_v38, 7 }
   0xe   :  { %1749 = vmatmul.mubr.msk.f32.gmra.mrb[2].mxu0 %vm62_vm1, %v29_v23  ;;  %1935 = vmatprep.subr.msk.mxu1 %vm87_vm0, %v44_v35  ;;  %v354_v53 = vld [vmem:[%s3464_s2 + $0x58] sm:$0xff]  ;;  %v32_v54 = vld [vmem:[%s3463_s0 + $0x20] sm:$0xff]  ;;  %v3009_v56 = vpack.c.bf16 %v377_v49, %v374_v48  ;;  %v376_v58 = vld [vmem:[%s3464_s2 + $0x108] sm:$0xff] }
   0xf   :  { %2244 = vmatpush1.bf16.msra.mxu0 %v2911_v24  ;;  %173 = vmatprep.mubr.f32.mxu0 %v2800_v3  ;;  %v380_v59 = vld [vmem:[%s3464_s2 + $0x128] sm:$0xff]  ;;  %v383_v60 = vld [vmem:[%s3464_s2 + $0x140] sm:$0xff]  ;;  %v3025_v61 = vpack.c.bf16 %v354_v53, %v351_v52  ;;  %v357_v62 = vld [vmem:[%s3464_s2 + $0x70] sm:$0xff]  ;;  %v3041_v1 = vpack.c.bf16 %v376_v58, %v373_v57  ;;  %v57_v40 = vsub.s32 2, %v48_v39 }
  0x10   :  { %2246 = vmatprep.subr.bf16.mxu0 %v2917_v26  ;;  %v360_v63 = vld [vmem:[%s3464_s2 + $0x88] sm:$0xff]  ;;  %v3044_v2 = vpack.c.bf16 %v383_v60, %v380_v59  ;;  %v379_v4 = vld [vmem:[%s3464_s2 + $0x120] sm:$0xff]  ;;  %v382_v5 = vld [vmem:[%s3464_s2 + $0x138] sm:$0xff]  ;;  %v49_v60 = vsub.s32 0, %v48_v39 }
  0x11   :  { %1936 = vmatpush3.msk.msra.mxu1 %vm87_vm0, %v44_v35  ;;  %v33_v0 = vld [vmem:[%s3463_s0 + $0x28] sm:$0xff]  ;;  %v386_v6 = vld [vmem:[%s3464_s2 + $0x158] sm:$0xff]  ;;  %v389_v7 = vld [vmem:[%s3464_s2 + $0x170] sm:$0xff]  ;;  %v3060_v8 = vpack.c.bf16 %v360_v63, %v357_v62  ;;  %v3076_v12 = vpack.c.bf16 %v382_v5, %v379_v4  ;;  %v53_v4 = vsub.s32 1, %v48_v39 }
  0x12   :  { %1750 = vmatmul.mubr.msk.f32.gmra.mrb[4].mxu0 %vm62_vm1, %v30_v33  ;;  %2269 = vmatprep.subr.bf16.mxu1 %v2801_v51  ;;  %v363_v9 = vld [vmem:[%s3464_s2 + $0xa0] sm:$0xff]  ;;  %v366_v10 = vld [vmem:[%s3464_s2 + $0xb8] sm:$0xff]  ;;  %v34_v11 = vld [vmem:[%s3463_s0 + $0x30] sm:$0xff]  ;;  %v3079_v13 = vpack.c.bf16 %v389_v7, %v386_v6 }
  0x13   :  { %2248 = vmatpush1.bf16.msra.mxu0 %v2940_v34  ;;  %179 = vmatprep.mubr.f32.mxu0 %v2800_v3  ;;  %v385_v14 = vld [vmem:[%s3464_s2 + $0x150] sm:$0xff]  ;;  %v388_v15 = vld [vmem:[%s3464_s2 + $0x168] sm:$0xff]  ;;  %v3089_v19 = vpack.c.bf16 %v366_v10, %v363_v9  ;;  %v35_v22 = vld [vmem:[%s3463_s0 + $0x38] sm:$0xff] }
  0x14   :  { %2250 = vmatprep.subr.bf16.mxu0 %v2946_v36  ;;  %1938 = vmatmul.mubr.msk.f32.vlgmr.msra.gmra.mrb[0].mxu1 %vm62_vm1, %v29_v23  ;;  %v369_v20 = vld [vmem:[%s3464_s2 + $0xd0] sm:$0xff]  ;;  %v372_v21 = vld [vmem:[%s3464_s2 + $0xe8] sm:$0xff]  ;;  %v3105_v23 = vpack.c.bf16 %v388_v15, %v385_v14  ;;  %v375_v27 = vld [vmem:[%s3464_s2 + $0x100] sm:$0xff] }
  0x15   :  { %2271 = vmatpush3.bf16.msra.mxu1 %v2991_v50  ;;  %1940 = vmatprep.mubr.msk.f32.mxu1 %vm62_vm1, %v30_v33  ;;  %v3110_v25 = vpack.c.bf16 %v372_v21, %v369_v20  ;;  %v378_v28 = vld [vmem:[%s3464_s2 + $0x118] sm:$0xff]  ;;  %v381_v30 = vld [vmem:[%s3464_s2 + $0x130] sm:$0xff]  ;;  %v384_v31 = vld [vmem:[%s3464_s2 + $0x148] sm:$0xff] }
  0x16   :  { %1751 = vmatmul.mubr.msk.f32.gmra.mrb[6].mxu0 %vm62_vm1, %v31_v43  ;;  %2272 = vmatprep.subr.bf16.mxu1 %v2801_v51  ;;  %v3126_v29 = vpack.c.bf16 %v378_v28, %v375_v27  ;;  %v3140_v32 = vpack.c.bf16 %v384_v31, %v381_v30  ;;  %v387_v33 = vld [vmem:[%s3464_s2 + $0x160] sm:$0xff]  ;;  %v390_v35 = vld [vmem:[%s3464_s2 + $0x178] sm:$0xff] }
  0x17   :  { %2252 = vmatpush1.bf16.msra.mxu0 %v2973_v44  ;;  %185 = vmatprep.mubr.f32.mxu0 %v2800_v3  ;;  %v3152_v37 = vpack.c.bf16 %v390_v35, %v387_v33  ;;  %v45_v41 = vld [vmem:[%s3465_s3] sm:$0x7] }
  0x18   :  { %2254 = vmatprep.subr.bf16.mxu0 %v2976_v45  ;;  %1941 = vmatmul.mubr.msk.f32.gmra.mrb[2].mxu1 %vm62_vm1, %v31_v43  ;;  %v58_v42 = vrot.slane %v45_v41, %v57_v40  ;;  %v3205_v6 = vrot.slane %v45_v41, %v49_v60  ;;  %v3207_v9 = vrot.slane %v45_v41, %v53_v4  ;;  %v3214_v31 = vld [vmem:[%s3466_s4] ss:$0 sm:$0xff] }
  0x19   :  { %2274 = vmatpush3.bf16.msra.mxu1 %v3025_v61  ;;  %1943 = vmatprep.mubr.msk.f32.mxu1 %vm62_vm1, %v32_v54 }
  0x1a   :  { %1752 = vmatmul.mubr.msk.f32.gmra.mrb[8].mxu0 %vm62_vm1, %v32_v54  ;;  %2275 = vmatprep.subr.bf16.mxu1 %v2801_v51 }
  0x1b   :  { %2256 = vmatpush1.bf16.msra.mxu0 %v3006_v55  ;;  %191 = vmatprep.mubr.f32.mxu0 %v2800_v3 }
  0x1c   :  { %2258 = vmatprep.subr.bf16.mxu0 %v3009_v56  ;;  %1944 = vmatmul.mubr.msk.f32.gmra.mrb[4].mxu1 %vm62_vm1, %v33_v0 }
  0x1d   :  { %2277 = vmatpush3.bf16.msra.mxu1 %v3060_v8  ;;  %1946 = vmatprep.mubr.msk.f32.mxu1 %vm62_vm1, %v34_v11 }
  0x1e   :  { %1753 = vmatmul.mubr.msk.f32.gmra.mrb[10].mxu0 %vm62_vm1, %v33_v0  ;;  %2278 = vmatprep.subr.bf16.mxu1 %v2801_v51 }
  0x1f   :  { %2260 = vmatpush1.bf16.msra.mxu0 %v3041_v1  ;;  %197 = vmatprep.mubr.f32.mxu0 %v2800_v3 }
  0x20   :  { %2262 = vmatprep.subr.bf16.mxu0 %v3044_v2  ;;  %1947 = vmatmul.mubr.msk.f32.gmra.mrb[6].mxu1 %vm62_vm1, %v35_v22 }
  0x21   :  { %2280 = vmatpush3.bf16.msra.mxu1 %v3089_v19  ;;  %1981 = vmatprep.mubr.msk.f32.mxu1 %vm2802_vm2, %v2800_v3 }
  0x22   :  { %1754 = vmatmul.mubr.msk.f32.gmra.mrb[12].mxu0 %vm62_vm1, %v34_v11  ;;  %2281 = vmatprep.subr.bf16.mxu1 %v2801_v51 }
  0x23   :  { %2264 = vmatpush1.bf16.msra.mxu0 %v3076_v12  ;;  %203 = vmatprep.mubr.f32.mxu0 %v2800_v3 }
  0x24   :  { %2266 = vmatprep.subr.bf16.mxu0 %v3079_v13 }
  0x25   :  { %2283 = vmatpush3.bf16.msra.mxu1 %v3110_v25 }
  0x26   :  { %1755 = vmatmul.mubr.msk.f32.gmra.mrb[14].mxu0 %vm62_vm1, %v35_v22  ;;  %2284 = vmatprep.subr.bf16.mxu1 %v2801_v51 }
  0x27   :  { %2268 = vmatpush1.bf16.msra.mxu0 %v3105_v23  ;;  %455 = vmatprep.mubr.f32.mxu0 %v2800_v3 }
  0x28   :  { %2294 = vmatprep.subr.bf16.mxu0 %v2885_v16 }
  0x29   :  { %2286 = vmatpush3.bf16.msra.mxu1 %v3126_v29 }
  0x2a   :  { %456 = vmatmul.mubr.f32.vlgmr.msra.gmra.mrb[0].mxu0 %v2800_v3  ;;  %2287 = vmatprep.subr.bf16.mxu1 %v2801_v51 }
  0x2b   :  { %2296 = vmatpush1.bf16.msra.mxu0 %v2887_v17  ;;  %627 = vmatprep.mubr.f32.mxu0 %v2800_v3 }
  0x2c   :  { %2298 = vmatprep.subr.bf16.mxu0 %v2889_v18 }
  0x2d   :  { %2289 = vmatpush3.bf16.msra.mxu1 %v3140_v32 }
  0x2e   :  { %2290 = vmatprep.subr.bf16.mxu1 %v2801_v51 }
  0x2f   :  { %2300 = vmatpush1.bf16.msra.mxu0 %v2911_v24 }
  0x30   :  { %2302 = vmatprep.subr.bf16.mxu0 %v2917_v26 }
  0x31   :  { %2292 = vmatpush3.bf16.msra.mxu1 %v3152_v37 }
  0x32   :  { %2325 = vmatprep.subr.bf16.mxu1 %v2801_v51 }
  0x33   :  { %2304 = vmatpush1.bf16.msra.mxu0 %v2940_v34 }
  0x34   :  { %2306 = vmatprep.subr.bf16.mxu0 %v2946_v36  ;;  %1982 = vmatmul.mubr.f32.vlgmr.msra.gmra.mrb[8].mxu1 %v2800_v3 }
  0x35   :  { %2327 = vmatpush3.bf16.msra.mxu1 %v2991_v50  ;;  %2016 = vmatprep.mubr.msk.f32.mxu1 %vm2802_vm2, %v2800_v3 }
  0x36   :  { %2328 = vmatprep.subr.bf16.mxu1 %v2801_v51 }
  0x37   :  { %2308 = vmatpush1.bf16.msra.mxu0 %v2973_v44 }
  0x38   :  { %2310 = vmatprep.subr.bf16.mxu0 %v2976_v45 }
  0x39   :  { %2330 = vmatpush3.bf16.msra.mxu1 %v3025_v61 }
  0x3a   :  { %2331 = vmatprep.subr.bf16.mxu1 %v2801_v51 }
  0x3b   :  { %2312 = vmatpush1.bf16.msra.mxu0 %v3006_v55 }
  0x3c   :  { %2314 = vmatprep.subr.bf16.mxu0 %v3009_v56 }
  0x3d   :  { %2333 = vmatpush3.bf16.msra.mxu1 %v3060_v8 }
  0x3e   :  { %2334 = vmatprep.subr.bf16.mxu1 %v2801_v51 }
  0x3f   :  { %2316 = vmatpush1.bf16.msra.mxu0 %v3041_v1 }
  0x40   :  { %2318 = vmatprep.subr.bf16.mxu0 %v3044_v2 }
  0x41   :  { %2336 = vmatpush3.bf16.msra.mxu1 %v3089_v19 }
  0x42   :  { %2337 = vmatprep.subr.bf16.mxu1 %v2801_v51 }
  0x43   :  { %2320 = vmatpush1.bf16.msra.mxu0 %v3076_v12 }
  0x44   :  { %2322 = vmatprep.subr.bf16.mxu0 %v3079_v13 }
  0x45   :  { %2339 = vmatpush3.bf16.msra.mxu1 %v3110_v25 }
  0x46   :  { %2340 = vmatprep.subr.bf16.mxu1 %v2801_v51 }
  0x47   :  { %2324 = vmatpush1.bf16.msra.mxu0 %v3105_v23 }
  0x48   :  { %2350 = vmatprep.subr.bf16.mxu0 %v2885_v16 }
  0x49   :  { %2342 = vmatpush3.bf16.msra.mxu1 %v3126_v29 }
  0x4a   :  { %2343 = vmatprep.subr.bf16.mxu1 %v2801_v51 }
  0x4d   :  { %2345 = vmatpush3.bf16.msra.mxu1 %v3140_v32 }
  0x4e   :  { %2346 = vmatprep.subr.bf16.mxu1 %v2801_v51 }
  0x51   :  { %2348 = vmatpush3.bf16.msra.mxu1 %v3152_v37 }
  0x52   :  { %2381 = vmatprep.subr.bf16.mxu1 %v2801_v51 }
  0xe7   :  { %v1939_v43 = vpop.f32.mrb[0].mxu1 }
  0xe8   :  { %v3191_v46 = vadd.f32 %v1939_v43, %v58_v42  ;;  %v276_v47 = vpop.f32.mrb[1].mxu1 }
  0xe9   :  { %v277_v39 = vadd.f32 %v276_v47, %v58_v42 }
  0xeb   :  { %v1942_v48 = vpop.f32.mrb[2].mxu1 }
  0xec   :  { %v3193_v49 = vadd.f32 %v1942_v48, %v58_v42  ;;  %v286_v52 = vpop.f32.mrb[3].mxu1 }
  0xed   :  { %v3195_v53 = vadd.f32 %v286_v52, %v58_v42 }
  0xef   :  { %v1945_v54 = vpop.f32.mrb[4].mxu1 }
  0xf0   :  { %v3197_v57 = vadd.f32 %v1945_v54, %v58_v42  ;;  %v296_v58 = vpop.f32.mrb[5].mxu1 }
  0xf1   :  { %v3199_v59 = vadd.f32 %v296_v58, %v58_v42 }
  0xf3   :  { %v1948_v62 = vpop.f32.mrb[6].mxu1 }
  0xf4   :  { %v3201_v63 = vadd.f32 %v1948_v62, %v58_v42  ;;  %v306_v0 = vpop.f32.mrb[7].mxu1 }
  0xf5   :  { %v3203_v5 = vadd.f32 %v306_v0, %v58_v42 }
  0xfd   :  { %v457_v7 = vpop.f32.mrb[0].mxu0 }
  0xfe   :  { %v2685_v10 = vadd.f32 %v457_v7, %v3205_v6  ;;  %v459_v11 = vpop.f32.mrb[1].mxu0 }
  0xff   :  { %v2686_v15 = vadd.f32 %v459_v11, %v3207_v9 }
 0x100   :  { %v1765_v14 = vmul.f32 -1.442695, %v2685_v10 }
 0x101   :  { %v1766_v20 = vmul.f32 -1.442695, %v2686_v15 }
 0x102   :  { %2720 = vpow2.f32 %v1765_v14 }
 0x103   :  { %2722 = vpow2.f32 %v1766_v20 }
 0x107   :  { %v528_v21 = vpop.f32.mrb[8].mxu1 }
 0x108   :  { %v1983_v27 = vpop.f32.mrb[9].mxu1  ;;  %v552_v35 = vadd.f32 %v3214_v31, %v528_v21 }
 0x10c   :  { %v2721_v22 = vpop.eup %2720 }
 0x10d   :  { %v536_v28 = vadd.f32 1.0, %v2721_v22  ;;  %v2723_v30 = vpop.eup %2722 }
 0x10e   :  { %v543_v33 = vadd.f32 1.0, %v2723_v30 }
 0x10f   :  { %2724 = vrcp.f32 %v536_v28 }
 0x110   :  { %2726 = vrcp.f32 %v543_v33 }
 0x119   :  { %v2725_v38 = vpop.eup %2724 }
 0x11a   :  { %v553_v40 = vmul.f32 %v2725_v38, %v552_v35  ;;  %v2727_v43 = vpop.eup %2726 }
 0x11b   :  { %v556_v48 = vsub.f32 1.0, %v2727_v43  ;;  %v558_v58 = vmul.f32 0.0, %v2727_v43 }
 0x11c   :  { %v554_v41 = vadd.f32 %v553_v40, %v277_v39 }
 0x11e   :  { %2728 = vtanh.f32 %v554_v41 }
 0x128   :  { %v2729_v52 = vpop.eup %2728 }
 0x129   :  { %v557_v54 = vmul.f32 %v2729_v52, %v556_v48 }
 0x12b   :  { %v559_v60 = vadd.f32 %v558_v58, %v557_v54 }
 0x12d   :  { %628 = vmatmul.mubr.f32.vlgmr.msra.gmra.mrb[2].mxu0 %v559_v60  ;;  %2017 = vmatmul.mubr.f32.vlgmr.msra.gmra.mrb[10].mxu1 %v559_v60 }
 0x12e   :  { %2352 = vmatpush1.bf16.msra.mxu0 %v2887_v17  ;;  %2383 = vmatpush3.bf16.msra.mxu1 %v2991_v50 }
 0x12f   :  { %2354 = vmatprep.subr.bf16.mxu0 %v2889_v18  ;;  %2384 = vmatprep.subr.bf16.mxu1 %v2801_v51 }
 0x130   :  { %793 = vmatprep.mubr.f32.mxu0 %v2800_v3  ;;  %2051 = vmatprep.mubr.msk.f32.mxu1 %vm2802_vm2, %v2800_v3 }
 0x132   :  { %2356 = vmatpush1.bf16.msra.mxu0 %v2911_v24  ;;  %2386 = vmatpush3.bf16.msra.mxu1 %v3025_v61 }
 0x133   :  { %2358 = vmatprep.subr.bf16.mxu0 %v2917_v26  ;;  %2387 = vmatprep.subr.bf16.mxu1 %v2801_v51 }
 0x136   :  { %2360 = vmatpush1.bf16.msra.mxu0 %v2940_v34  ;;  %2389 = vmatpush3.bf16.msra.mxu1 %v3060_v8 }
 0x137   :  { %2362 = vmatprep.subr.bf16.mxu0 %v2946_v36  ;;  %2390 = vmatprep.subr.bf16.mxu1 %v2801_v51 }
 0x13a   :  { %2364 = vmatpush1.bf16.msra.mxu0 %v2973_v44  ;;  %2392 = vmatpush3.bf16.msra.mxu1 %v3089_v19 }
 0x13b   :  { %2366 = vmatprep.subr.bf16.mxu0 %v2976_v45  ;;  %2393 = vmatprep.subr.bf16.mxu1 %v2801_v51 }
 0x13e   :  { %2368 = vmatpush1.bf16.msra.mxu0 %v3006_v55  ;;  %2395 = vmatpush3.bf16.msra.mxu1 %v3110_v25 }
 0x13f   :  { %2370 = vmatprep.subr.bf16.mxu0 %v3009_v56  ;;  %2396 = vmatprep.subr.bf16.mxu1 %v2801_v51 }
 0x142   :  { %2372 = vmatpush1.bf16.msra.mxu0 %v3041_v1  ;;  %2398 = vmatpush3.bf16.msra.mxu1 %v3126_v29 }
 0x143   :  { %2374 = vmatprep.subr.bf16.mxu0 %v3044_v2  ;;  %2399 = vmatprep.subr.bf16.mxu1 %v2801_v51 }
 0x146   :  { %2376 = vmatpush1.bf16.msra.mxu0 %v3076_v12  ;;  %2401 = vmatpush3.bf16.msra.mxu1 %v3140_v32 }
 0x147   :  { %2378 = vmatprep.subr.bf16.mxu0 %v3079_v13  ;;  %2402 = vmatprep.subr.bf16.mxu1 %v2801_v51 }
 0x14a   :  { %2380 = vmatpush1.bf16.msra.mxu0 %v3105_v23  ;;  %2404 = vmatpush3.bf16.msra.mxu1 %v3152_v37 }
 0x14b   :  { %2406 = vmatprep.subr.bf16.mxu0 %v2885_v16  ;;  %2437 = vmatprep.subr.bf16.mxu1 %v2801_v51 }
 0x200   :  { %v629_v42 = vpop.f32.mrb[2].mxu0  ;;  %v700_v47 = vpop.f32.mrb[10].mxu1 }
 0x201   :  { %v2687_v62 = vadd.f32 %v629_v42, %v3205_v6  ;;  %v631_v0 = vpop.f32.mrb[3].mxu0  ;;  %v2018_v4 = vpop.f32.mrb[11].mxu1  ;;  %v718_v22 = vadd.f32 %v3214_v31, %v700_v47 }
 0x202   :  { %v2688_v10 = vadd.f32 %v631_v0, %v3207_v9 }
 0x203   :  { %v1768_v7 = vmul.f32 -1.442695, %v2687_v62 }
 0x204   :  { %v1769_v11 = vmul.f32 -1.442695, %v2688_v10 }
 0x205   :  { %2730 = vpow2.f32 %v1768_v7 }
 0x206   :  { %2732 = vpow2.f32 %v1769_v11 }
 0x20f   :  { %v2731_v14 = vpop.eup %2730 }
 0x210   :  { %v708_v15 = vadd.f32 1.0, %v2731_v14  ;;  %v2733_v20 = vpop.eup %2732 }
 0x211   :  { %v715_v21 = vadd.f32 1.0, %v2733_v20 }
 0x212   :  { %2734 = vrcp.f32 %v708_v15 }
 0x213   :  { %2736 = vrcp.f32 %v715_v21 }
 0x21c   :  { %v2735_v27 = vpop.eup %2734 }
 0x21d   :  { %v719_v28 = vmul.f32 %v2735_v27, %v718_v22  ;;  %v2737_v33 = vpop.eup %2736 }
 0x21e   :  { %v722_v35 = vsub.f32 1.0, %v2737_v33  ;;  %v724_v40 = vmul.f32 %v2737_v33, %v559_v60 }
 0x21f   :  { %v720_v30 = vadd.f32 %v719_v28, %v3191_v46 }
 0x221   :  { %2738 = vtanh.f32 %v720_v30 }
 0x22b   :  { %v2739_v38 = vpop.eup %2738 }
 0x22c   :  { %v723_v39 = vmul.f32 %v2739_v38, %v722_v35 }
 0x22e   :  { %v725_v41 = vadd.f32 %v724_v40, %v723_v39 }
 0x230   :  { %794 = vmatmul.mubr.f32.vlgmr.msra.gmra.mrb[4].mxu0 %v725_v41  ;;  %2052 = vmatmul.mubr.f32.vlgmr.msra.gmra.mrb[12].mxu1 %v725_v41 }
 0x231   :  { %2408 = vmatpush1.bf16.msra.mxu0 %v2887_v17  ;;  %2439 = vmatpush3.bf16.msra.mxu1 %v2991_v50 }
 0x232   :  { %2410 = vmatprep.subr.bf16.mxu0 %v2889_v18  ;;  %2440 = vmatprep.subr.bf16.mxu1 %v2801_v51 }
 0x233   :  { %959 = vmatprep.mubr.f32.mxu0 %v2800_v3  ;;  %2086 = vmatprep.mubr.msk.f32.mxu1 %vm2802_vm2, %v2800_v3 }
 0x235   :  { %2412 = vmatpush1.bf16.msra.mxu0 %v2911_v24  ;;  %2442 = vmatpush3.bf16.msra.mxu1 %v3025_v61 }
 0x236   :  { %2414 = vmatprep.subr.bf16.mxu0 %v2917_v26  ;;  %2443 = vmatprep.subr.bf16.mxu1 %v2801_v51 }
 0x239   :  { %2416 = vmatpush1.bf16.msra.mxu0 %v2940_v34  ;;  %2445 = vmatpush3.bf16.msra.mxu1 %v3060_v8 }
 0x23a   :  { %2418 = vmatprep.subr.bf16.mxu0 %v2946_v36  ;;  %2446 = vmatprep.subr.bf16.mxu1 %v2801_v51 }
 0x23d   :  { %2420 = vmatpush1.bf16.msra.mxu0 %v2973_v44  ;;  %2448 = vmatpush3.bf16.msra.mxu1 %v3089_v19 }
 0x23e   :  { %2422 = vmatprep.subr.bf16.mxu0 %v2976_v45  ;;  %2449 = vmatprep.subr.bf16.mxu1 %v2801_v51 }
 0x241   :  { %2424 = vmatpush1.bf16.msra.mxu0 %v3006_v55  ;;  %2451 = vmatpush3.bf16.msra.mxu1 %v3110_v25 }
 0x242   :  { %2426 = vmatprep.subr.bf16.mxu0 %v3009_v56  ;;  %2452 = vmatprep.subr.bf16.mxu1 %v2801_v51 }
 0x245   :  { %2428 = vmatpush1.bf16.msra.mxu0 %v3041_v1  ;;  %2454 = vmatpush3.bf16.msra.mxu1 %v3126_v29 }
 0x246   :  { %2430 = vmatprep.subr.bf16.mxu0 %v3044_v2  ;;  %2455 = vmatprep.subr.bf16.mxu1 %v2801_v51 }
 0x249   :  { %2432 = vmatpush1.bf16.msra.mxu0 %v3076_v12  ;;  %2457 = vmatpush3.bf16.msra.mxu1 %v3140_v32 }
 0x24a   :  { %2434 = vmatprep.subr.bf16.mxu0 %v3079_v13  ;;  %2458 = vmatprep.subr.bf16.mxu1 %v2801_v51 }
 0x24d   :  { %2436 = vmatpush1.bf16.msra.mxu0 %v3105_v23  ;;  %2460 = vmatpush3.bf16.msra.mxu1 %v3152_v37 }
 0x24e   :  { %2462 = vmatprep.subr.bf16.mxu0 %v2885_v16  ;;  %2493 = vmatprep.subr.bf16.mxu1 %v2801_v51 }
 0x303   :  { %v795_v46 = vpop.f32.mrb[4].mxu0  ;;  %v866_v43 = vpop.f32.mrb[12].mxu1 }
 0x304   :  { %v2689_v48 = vadd.f32 %v795_v46, %v3205_v6  ;;  %v797_v52 = vpop.f32.mrb[5].mxu0  ;;  %v2053_v54 = vpop.f32.mrb[13].mxu1  ;;  %v884_v7 = vadd.f32 %v3214_v31, %v866_v43 }
 0x305   :  { %v2690_v60 = vadd.f32 %v797_v52, %v3207_v9 }
 0x306   :  { %v1770_v58 = vmul.f32 -1.442695, %v2689_v48 }
 0x307   :  { %v1771_v42 = vmul.f32 -1.442695, %v2690_v60 }
 0x308   :  { %2740 = vpow2.f32 %v1770_v58 }
 0x309   :  { %2742 = vpow2.f32 %v1771_v42 }
 0x312   :  { %v2741_v47 = vpop.eup %2740 }
 0x313   :  { %v874_v62 = vadd.f32 1.0, %v2741_v47  ;;  %v2743_v0 = vpop.eup %2742 }
 0x314   :  { %v881_v4 = vadd.f32 1.0, %v2743_v0 }
 0x315   :  { %2744 = vrcp.f32 %v874_v62 }
 0x316   :  { %2746 = vrcp.f32 %v881_v4 }
 0x31f   :  { %v2745_v10 = vpop.eup %2744 }
 0x320   :  { %v885_v11 = vmul.f32 %v2745_v10, %v884_v7  ;;  %v2747_v15 = vpop.eup %2746 }
 0x321   :  { %v888_v20 = vsub.f32 1.0, %v2747_v15  ;;  %v890_v27 = vmul.f32 %v2747_v15, %v725_v41 }
 0x322   :  { %v886_v14 = vadd.f32 %v885_v11, %v3195_v53 }
 0x324   :  { %2748 = vtanh.f32 %v886_v14 }
 0x32e   :  { %v2749_v21 = vpop.eup %2748 }
 0x32f   :  { %v889_v22 = vmul.f32 %v2749_v21, %v888_v20 }
 0x331   :  { %v891_v28 = vadd.f32 %v890_v27, %v889_v22 }
 0x333   :  { %960 = vmatmul.mubr.f32.vlgmr.msra.gmra.mrb[6].mxu0 %v891_v28  ;;  %2087 = vmatmul.mubr.f32.vlgmr.msra.gmra.mrb[14].mxu1 %v891_v28 }
 0x334   :  { %2464 = vmatpush1.bf16.msra.mxu0 %v2887_v17  ;;  %2495 = vmatpush3.bf16.msra.mxu1 %v2991_v50 }
 0x335   :  { %2466 = vmatprep.subr.bf16.mxu0 %v2889_v18  ;;  %2496 = vmatprep.subr.bf16.mxu1 %v2801_v51 }
 0x336   :  { %1125 = vmatprep.mubr.f32.mxu0 %v2800_v3  ;;  %2121 = vmatprep.mubr.msk.f32.mxu1 %vm2802_vm2, %v2800_v3 }
 0x338   :  { %2468 = vmatpush1.bf16.msra.mxu0 %v2911_v24  ;;  %2498 = vmatpush3.bf16.msra.mxu1 %v3025_v61 }
 0x339   :  { %2470 = vmatprep.subr.bf16.mxu0 %v2917_v26  ;;  %2499 = vmatprep.subr.bf16.mxu1 %v2801_v51 }
 0x33c   :  { %2472 = vmatpush1.bf16.msra.mxu0 %v2940_v34  ;;  %2501 = vmatpush3.bf16.msra.mxu1 %v3060_v8 }
 0x33d   :  { %2474 = vmatprep.subr.bf16.mxu0 %v2946_v36  ;;  %2502 = vmatprep.subr.bf16.mxu1 %v2801_v51 }
 0x340   :  { %2476 = vmatpush1.bf16.msra.mxu0 %v2973_v44  ;;  %2504 = vmatpush3.bf16.msra.mxu1 %v3089_v19 }
 0x341   :  { %2478 = vmatprep.subr.bf16.mxu0 %v2976_v45  ;;  %2505 = vmatprep.subr.bf16.mxu1 %v2801_v51 }
 0x344   :  { %2480 = vmatpush1.bf16.msra.mxu0 %v3006_v55  ;;  %2507 = vmatpush3.bf16.msra.mxu1 %v3110_v25 }
 0x345   :  { %2482 = vmatprep.subr.bf16.mxu0 %v3009_v56  ;;  %2508 = vmatprep.subr.bf16.mxu1 %v2801_v51 }
 0x348   :  { %2484 = vmatpush1.bf16.msra.mxu0 %v3041_v1  ;;  %2510 = vmatpush3.bf16.msra.mxu1 %v3126_v29 }
 0x349   :  { %2486 = vmatprep.subr.bf16.mxu0 %v3044_v2  ;;  %2511 = vmatprep.subr.bf16.mxu1 %v2801_v51 }
 0x34c   :  { %2488 = vmatpush1.bf16.msra.mxu0 %v3076_v12  ;;  %2513 = vmatpush3.bf16.msra.mxu1 %v3140_v32 }
 0x34d   :  { %2490 = vmatprep.subr.bf16.mxu0 %v3079_v13  ;;  %2514 = vmatprep.subr.bf16.mxu1 %v2801_v51 }
 0x350   :  { %2492 = vmatpush1.bf16.msra.mxu0 %v3105_v23  ;;  %2516 = vmatpush3.bf16.msra.mxu1 %v3152_v37 }
 0x351   :  { %2518 = vmatprep.subr.bf16.mxu0 %v2885_v16  ;;  %2549 = vmatprep.subr.bf16.mxu1 %v2801_v51 }
 0x406   :  { %v961_v53 = vpop.f32.mrb[6].mxu0  ;;  %v1032_v30 = vpop.f32.mrb[14].mxu1 }
 0x407   :  { %v2691_v33 = vadd.f32 %v961_v53, %v3205_v6  ;;  %v963_v35 = vpop.f32.mrb[7].mxu0  ;;  %v2088_v38 = vpop.f32.mrb[15].mxu1  ;;  %v1050_v54 = vadd.f32 %v3214_v31, %v1032_v30 }
 0x408   :  { %v2692_v40 = vadd.f32 %v963_v35, %v3207_v9 }
 0x409   :  { %v1772_v39 = vmul.f32 -1.442695, %v2691_v33 }
 0x40a   :  { %v1773_v41 = vmul.f32 -1.442695, %v2692_v40 }
 0x40b   :  { %2750 = vpow2.f32 %v1772_v39 }
 0x40c   :  { %2752 = vpow2.f32 %v1773_v41 }
 0x415   :  { %v2751_v46 = vpop.eup %2750 }
 0x416   :  { %v1040_v43 = vadd.f32 1.0, %v2751_v46  ;;  %v2753_v48 = vpop.eup %2752 }
 0x417   :  { %v1047_v52 = vadd.f32 1.0, %v2753_v48 }
 0x418   :  { %2754 = vrcp.f32 %v1040_v43 }
 0x419   :  { %2756 = vrcp.f32 %v1047_v52 }
 0x422   :  { %v2755_v58 = vpop.eup %2754 }
 0x423   :  { %v1051_v60 = vmul.f32 %v2755_v58, %v1050_v54  ;;  %v2757_v47 = vpop.eup %2756 }
 0x424   :  { %v1054_v62 = vsub.f32 1.0, %v2757_v47  ;;  %v1056_v7 = vmul.f32 %v2757_v47, %v891_v28 }
 0x425   :  { %v1052_v42 = vadd.f32 %v1051_v60, %v3193_v49 }
 0x427   :  { %2758 = vtanh.f32 %v1052_v42 }
 0x431   :  { %v2759_v0 = vpop.eup %2758 }
 0x432   :  { %v1055_v4 = vmul.f32 %v2759_v0, %v1054_v62 }
 0x434   :  { %v1057_v10 = vadd.f32 %v1056_v7, %v1055_v4 }
 0x436   :  { %1126 = vmatmul.mubr.f32.vlgmr.msra.gmra.mrb[8].mxu0 %v1057_v10  ;;  %2122 = vmatmul.mubr.f32.vlgmr.msra.gmra.mrb[16].mxu1 %v1057_v10 }
 0x437   :  { %2520 = vmatpush1.bf16.msra.mxu0 %v2887_v17  ;;  %2551 = vmatpush3.bf16.msra.mxu1 %v2991_v50 }
 0x438   :  { %2522 = vmatprep.subr.bf16.mxu0 %v2889_v18  ;;  %2552 = vmatprep.subr.bf16.mxu1 %v2801_v51 }
 0x439   :  { %1291 = vmatprep.mubr.f32.mxu0 %v2800_v3  ;;  %2156 = vmatprep.mubr.msk.f32.mxu1 %vm2802_vm2, %v2800_v3 }
 0x43b   :  { %2524 = vmatpush1.bf16.msra.mxu0 %v2911_v24  ;;  %2554 = vmatpush3.bf16.msra.mxu1 %v3025_v61 }
 0x43c   :  { %2526 = vmatprep.subr.bf16.mxu0 %v2917_v26  ;;  %2555 = vmatprep.subr.bf16.mxu1 %v2801_v51 }
 0x43f   :  { %2528 = vmatpush1.bf16.msra.mxu0 %v2940_v34  ;;  %2557 = vmatpush3.bf16.msra.mxu1 %v3060_v8 }
 0x440   :  { %2530 = vmatprep.subr.bf16.mxu0 %v2946_v36  ;;  %2558 = vmatprep.subr.bf16.mxu1 %v2801_v51 }
 0x443   :  { %2532 = vmatpush1.bf16.msra.mxu0 %v2973_v44  ;;  %2560 = vmatpush3.bf16.msra.mxu1 %v3089_v19 }
 0x444   :  { %2534 = vmatprep.subr.bf16.mxu0 %v2976_v45  ;;  %2561 = vmatprep.subr.bf16.mxu1 %v2801_v51 }
 0x447   :  { %2536 = vmatpush1.bf16.msra.mxu0 %v3006_v55  ;;  %2563 = vmatpush3.bf16.msra.mxu1 %v3110_v25 }
 0x448   :  { %2538 = vmatprep.subr.bf16.mxu0 %v3009_v56  ;;  %2564 = vmatprep.subr.bf16.mxu1 %v2801_v51 }
 0x44b   :  { %2540 = vmatpush1.bf16.msra.mxu0 %v3041_v1  ;;  %2566 = vmatpush3.bf16.msra.mxu1 %v3126_v29 }
 0x44c   :  { %2542 = vmatprep.subr.bf16.mxu0 %v3044_v2  ;;  %2567 = vmatprep.subr.bf16.mxu1 %v2801_v51 }
 0x44f   :  { %2544 = vmatpush1.bf16.msra.mxu0 %v3076_v12  ;;  %2569 = vmatpush3.bf16.msra.mxu1 %v3140_v32 }
 0x450   :  { %2546 = vmatprep.subr.bf16.mxu0 %v3079_v13  ;;  %2570 = vmatprep.subr.bf16.mxu1 %v2801_v51 }
 0x453   :  { %2548 = vmatpush1.bf16.msra.mxu0 %v3105_v23  ;;  %2572 = vmatpush3.bf16.msra.mxu1 %v3152_v37 }
 0x454   :  { %2574 = vmatprep.subr.bf16.mxu0 %v2885_v16  ;;  %2605 = vmatprep.subr.bf16.mxu1 %v2801_v51 }
 0x509   :  { %v1127_v49 = vpop.f32.mrb[8].mxu0  ;;  %v1198_v11 = vpop.f32.mrb[16].mxu1 }
 0x50a   :  { %v2693_v14 = vadd.f32 %v1127_v49, %v3205_v6  ;;  %v1129_v15 = vpop.f32.mrb[9].mxu0  ;;  %v2123_v20 = vpop.f32.mrb[17].mxu1  ;;  %v1216_v35 = vadd.f32 %v3214_v31, %v1198_v11 }
 0x50b   :  { %v2694_v22 = vadd.f32 %v1129_v15, %v3207_v9 }
 0x50c   :  { %v1774_v21 = vmul.f32 -1.442695, %v2693_v14 }
 0x50d   :  { %v1775_v27 = vmul.f32 -1.442695, %v2694_v22 }
 0x50e   :  { %2760 = vpow2.f32 %v1774_v21 }
 0x50f   :  { %2762 = vpow2.f32 %v1775_v27 }
 0x518   :  { %v2761_v28 = vpop.eup %2760 }
 0x519   :  { %v1206_v53 = vadd.f32 1.0, %v2761_v28  ;;  %v2763_v30 = vpop.eup %2762 }
 0x51a   :  { %v1213_v33 = vadd.f32 1.0, %v2763_v30 }
 0x51b   :  { %2764 = vrcp.f32 %v1206_v53 }
 0x51c   :  { %2766 = vrcp.f32 %v1213_v33 }
 0x525   :  { %v2765_v38 = vpop.eup %2764 }
 0x526   :  { %v1217_v39 = vmul.f32 %v2765_v38, %v1216_v35  ;;  %v2767_v41 = vpop.eup %2766 }
 0x527   :  { %v1220_v46 = vsub.f32 1.0, %v2767_v41  ;;  %v1222_v52 = vmul.f32 %v2767_v41, %v1057_v10 }
 0x528   :  { %v1218_v40 = vadd.f32 %v1217_v39, %v3199_v59 }
 0x52a   :  { %2768 = vtanh.f32 %v1218_v40 }
 0x534   :  { %v2769_v43 = vpop.eup %2768 }
 0x535   :  { %v1221_v48 = vmul.f32 %v2769_v43, %v1220_v46 }
 0x537   :  { %v1223_v54 = vadd.f32 %v1222_v52, %v1221_v48 }
 0x539   :  { %1292 = vmatmul.mubr.f32.vlgmr.msra.gmra.mrb[10].mxu0 %v1223_v54  ;;  %2157 = vmatmul.mubr.f32.vlgmr.msra.gmra.mrb[18].mxu1 %v1223_v54 }
 0x53a   :  { %2576 = vmatpush1.bf16.msra.mxu0 %v2887_v17  ;;  %2607 = vmatpush3.bf16.msra.mxu1 %v2991_v50 }
 0x53b   :  { %2578 = vmatprep.subr.bf16.mxu0 %v2889_v18  ;;  %2608 = vmatprep.subr.bf16.mxu1 %v2801_v51 }
 0x53c   :  { %1457 = vmatprep.mubr.f32.mxu0 %v2800_v3  ;;  %2191 = vmatprep.mubr.msk.f32.mxu1 %vm2802_vm2, %v2800_v3 }
 0x53e   :  { %2580 = vmatpush1.bf16.msra.mxu0 %v2911_v24  ;;  %2610 = vmatpush3.bf16.msra.mxu1 %v3025_v61 }
 0x53f   :  { %2582 = vmatprep.subr.bf16.mxu0 %v2917_v26  ;;  %2611 = vmatprep.subr.bf16.mxu1 %v2801_v51 }
 0x542   :  { %2584 = vmatpush1.bf16.msra.mxu0 %v2940_v34  ;;  %2613 = vmatpush3.bf16.msra.mxu1 %v3060_v8 }
 0x543   :  { %2586 = vmatprep.subr.bf16.mxu0 %v2946_v36  ;;  %2614 = vmatprep.subr.bf16.mxu1 %v2801_v51 }
 0x546   :  { %2588 = vmatpush1.bf16.msra.mxu0 %v2973_v44  ;;  %2616 = vmatpush3.bf16.msra.mxu1 %v3089_v19 }
 0x547   :  { %2590 = vmatprep.subr.bf16.mxu0 %v2976_v45  ;;  %2617 = vmatprep.subr.bf16.mxu1 %v2801_v51 }
 0x54a   :  { %2592 = vmatpush1.bf16.msra.mxu0 %v3006_v55  ;;  %2619 = vmatpush3.bf16.msra.mxu1 %v3110_v25 }
 0x54b   :  { %2594 = vmatprep.subr.bf16.mxu0 %v3009_v56  ;;  %2620 = vmatprep.subr.bf16.mxu1 %v2801_v51 }
 0x54e   :  { %2596 = vmatpush1.bf16.msra.mxu0 %v3041_v1  ;;  %2622 = vmatpush3.bf16.msra.mxu1 %v3126_v29 }
 0x54f   :  { %2598 = vmatprep.subr.bf16.mxu0 %v3044_v2  ;;  %2623 = vmatprep.subr.bf16.mxu1 %v2801_v51 }
 0x552   :  { %2600 = vmatpush1.bf16.msra.mxu0 %v3076_v12  ;;  %2625 = vmatpush3.bf16.msra.mxu1 %v3140_v32 }
 0x553   :  { %2602 = vmatprep.subr.bf16.mxu0 %v3079_v13  ;;  %2626 = vmatprep.subr.bf16.mxu1 %v2801_v51 }
 0x556   :  { %2604 = vmatpush1.bf16.msra.mxu0 %v3105_v23  ;;  %2628 = vmatpush3.bf16.msra.mxu1 %v3152_v37 }
 0x557   :  { %2630 = vmatprep.subr.bf16.mxu0 %v2885_v16  ;;  %2661 = vmatprep.subr.bf16.mxu1 %v2801_v51 }
 0x60c   :  { %v1293_v59 = vpop.f32.mrb[10].mxu0  ;;  %v1364_v58 = vpop.f32.mrb[18].mxu1 }
 0x60d   :  { %v2695_v60 = vadd.f32 %v1293_v59, %v3205_v6  ;;  %v1295_v42 = vpop.f32.mrb[11].mxu0  ;;  %v2158_v47 = vpop.f32.mrb[19].mxu1  ;;  %v1382_v16 = vadd.f32 %v3214_v31, %v1364_v58 }
 0x60e   :  { %v2696_v0 = vadd.f32 %v1295_v42, %v3207_v9  ;;  %v1782_v47 = vld [vmem:[%s3468_s5] ss:$0 sm:$0xff] }
 0x60f   :  { %v1776_v62 = vmul.f32 -1.442695, %v2695_v60 }
 0x610   :  { %v1777_v4 = vmul.f32 -1.442695, %v2696_v0 }
 0x611   :  { %2770 = vpow2.f32 %v1776_v62 }
 0x612   :  { %2772 = vpow2.f32 %v1777_v4 }
 0x61b   :  { %v2771_v7 = vpop.eup %2770 }
 0x61c   :  { %v1372_v10 = vadd.f32 1.0, %v2771_v7  ;;  %v2773_v49 = vpop.eup %2772 }
 0x61d   :  { %v1379_v11 = vadd.f32 1.0, %v2773_v49 }
 0x61e   :  { %2774 = vrcp.f32 %v1372_v10 }
 0x61f   :  { %2776 = vrcp.f32 %v1379_v11 }
 0x628   :  { %v2775_v14 = vpop.eup %2774 }
 0x629   :  { %v1383_v15 = vmul.f32 %v2775_v14, %v1382_v16  ;;  %v2777_v21 = vpop.eup %2776 }
 0x62a   :  { %v1386_v22 = vsub.f32 1.0, %v2777_v21  ;;  %v1388_v53 = vmul.f32 %v2777_v21, %v1223_v54 }
 0x62b   :  { %v1384_v20 = vadd.f32 %v1383_v15, %v3197_v57 }
 0x62d   :  { %2778 = vtanh.f32 %v1384_v20 }
 0x637   :  { %v2779_v27 = vpop.eup %2778 }
 0x638   :  { %v1387_v28 = vmul.f32 %v2779_v27, %v1386_v22 }
 0x63a   :  { %v1389_v30 = vadd.f32 %v1388_v53, %v1387_v28 }
 0x63c   :  { %1458 = vmatmul.mubr.f32.vlgmr.msra.gmra.mrb[12].mxu0 %v1389_v30  ;;  %2192 = vmatmul.mubr.f32.vlgmr.msra.gmra.mrb[20].mxu1 %v1389_v30 }
 0x63d   :  { %2632 = vmatpush1.bf16.msra.mxu0 %v2887_v17  ;;  %2663 = vmatpush3.bf16.msra.mxu1 %v2991_v50 }
 0x63e   :  { %2634 = vmatprep.subr.bf16.mxu0 %v2889_v18  ;;  %2664 = vmatprep.subr.bf16.mxu1 %v2801_v51 }
 0x63f   :  { %1623 = vmatprep.mubr.f32.mxu0 %v2800_v3  ;;  %2226 = vmatprep.mubr.msk.f32.mxu1 %vm2802_vm2, %v2800_v3 }
 0x641   :  { %2636 = vmatpush1.bf16.msra.mxu0 %v2911_v24  ;;  %2666 = vmatpush3.bf16.msra.mxu1 %v3025_v61 }
 0x642   :  { %2638 = vmatprep.subr.bf16.mxu0 %v2917_v26  ;;  %2667 = vmatprep.subr.bf16.mxu1 %v2801_v51 }
 0x645   :  { %2640 = vmatpush1.bf16.msra.mxu0 %v2940_v34  ;;  %2669 = vmatpush3.bf16.msra.mxu1 %v3060_v8 }
 0x646   :  { %2642 = vmatprep.subr.bf16.mxu0 %v2946_v36  ;;  %2670 = vmatprep.subr.bf16.mxu1 %v2801_v51 }
 0x649   :  { %2644 = vmatpush1.bf16.msra.mxu0 %v2973_v44  ;;  %2672 = vmatpush3.bf16.msra.mxu1 %v3089_v19 }
 0x64a   :  { %2646 = vmatprep.subr.bf16.mxu0 %v2976_v45  ;;  %2673 = vmatprep.subr.bf16.mxu1 %v2801_v51 }
 0x64d   :  { %2648 = vmatpush1.bf16.msra.mxu0 %v3006_v55  ;;  %2675 = vmatpush3.bf16.msra.mxu1 %v3110_v25 }
 0x64e   :  { %2650 = vmatprep.subr.bf16.mxu0 %v3009_v56  ;;  %2676 = vmatprep.subr.bf16.mxu1 %v2801_v51 }
 0x651   :  { %2652 = vmatpush1.bf16.msra.mxu0 %v3041_v1  ;;  %2678 = vmatpush3.bf16.msra.mxu1 %v3126_v29  ;;  %v12_v29 = vstv %s3467_s6 }
 0x652   :  { %2654 = vmatprep.subr.bf16.mxu0 %v3044_v2  ;;  %2679 = vmatprep.subr.bf16.mxu1 %v2801_v51  ;;  %13 = vst [vmem:[#allocation3] sm:$0x1] %v12_v29 }
 0x655   :  { %2656 = vmatpush1.bf16.msra.mxu0 %v3076_v12  ;;  %2681 = vmatpush3.bf16.msra.mxu1 %v3140_v32 }
 0x656   :  { %2658 = vmatprep.subr.bf16.mxu0 %v3079_v13  ;;  %2682 = vmatprep.subr.bf16.mxu1 %v2801_v51 }
 0x659   :  { %2660 = vmatpush1.bf16.msra.mxu0 %v3105_v23  ;;  %2684 = vmatpush3.bf16.msra.mxu1 %v3152_v37  ;;  %v1783_v4 = vld [vmem:[#allocation3] ss:$0 sm:$0xff] }
 0x70f   :  { %v1459_v3 = vpop.f32.mrb[12].mxu0  ;;  %v1530_v17 = vpop.f32.mrb[20].mxu1 }
 0x710   :  { %v2697_v18 = vadd.f32 %v1459_v3, %v3205_v6  ;;  %v1461_v24 = vpop.f32.mrb[13].mxu0  ;;  %v2193_v26 = vpop.f32.mrb[21].mxu1  ;;  %v1548_v56 = vadd.f32 %v3214_v31, %v1530_v17 }
 0x711   :  { %v2698_v36 = vadd.f32 %v1461_v24, %v3207_v9 }
 0x712   :  { %v1778_v34 = vmul.f32 -1.442695, %v2697_v18 }
 0x713   :  { %v1779_v44 = vmul.f32 -1.442695, %v2698_v36 }
 0x714   :  { %2780 = vpow2.f32 %v1778_v34 }
 0x715   :  { %2782 = vpow2.f32 %v1779_v44 }
 0x71e   :  { %v2781_v45 = vpop.eup %2780 }
 0x71f   :  { %v1538_v50 = vadd.f32 1.0, %v2781_v45  ;;  %v2783_v51 = vpop.eup %2782 }
 0x720   :  { %v1545_v55 = vadd.f32 1.0, %v2783_v51 }
 0x721   :  { %2784 = vrcp.f32 %v1538_v50 }
 0x722   :  { %2786 = vrcp.f32 %v1545_v55 }
 0x72b   :  { %v2785_v61 = vpop.eup %2784 }
 0x72c   :  { %v1549_v1 = vmul.f32 %v2785_v61, %v1548_v56  ;;  %v2787_v8 = vpop.eup %2786 }
 0x72d   :  { %v1552_v12 = vsub.f32 1.0, %v2787_v8  ;;  %v1554_v23 = vmul.f32 %v2787_v8, %v1389_v30 }
 0x72e   :  { %v1550_v2 = vadd.f32 %v1549_v1, %v3203_v5 }
 0x730   :  { %2788 = vtanh.f32 %v1550_v2 }
 0x73a   :  { %v2789_v13 = vpop.eup %2788 }
 0x73b   :  { %v1553_v19 = vmul.f32 %v2789_v13, %v1552_v12 }
 0x73d   :  { %v1555_v25 = vadd.f32 %v1554_v23, %v1553_v19 }
 0x73f   :  { %1624 = vmatmul.mubr.f32.vlgmr.msra.gmra.mrb[14].mxu0 %v1555_v25  ;;  %2227 = vmatmul.mubr.f32.vlgmr.msra.gmra.mrb[22].mxu1 %v1555_v25 }
 0x812   :  { %v1625_v32 = vpop.f32.mrb[14].mxu0  ;;  %v1696_v37 = vpop.f32.mrb[22].mxu1 }
 0x813   :  { %v2699_v57 = vadd.f32 %v1625_v32, %v3205_v6  ;;  %v1627_v33 = vpop.f32.mrb[15].mxu0  ;;  %v2228_v5 = vpop.f32.mrb[23].mxu1  ;;  %v1714_v48 = vadd.f32 %v3214_v31, %v1696_v37 }
 0x814   :  { %v2700_v38 = vadd.f32 %v1627_v33, %v3207_v9 }
 0x815   :  { %v1780_v35 = vmul.f32 -1.442695, %v2699_v57 }
 0x816   :  { %v1781_v39 = vmul.f32 -1.442695, %v2700_v38 }
 0x817   :  { %2790 = vpow2.f32 %v1780_v35 }
 0x818   :  { %2792 = vpow2.f32 %v1781_v39 }
 0x821   :  { %v2791_v40 = vpop.eup %2790 }
 0x822   :  { %v1704_v41 = vadd.f32 1.0, %v2791_v40  ;;  %v2793_v46 = vpop.eup %2792 }
 0x823   :  { %v1711_v43 = vadd.f32 1.0, %v2793_v46 }
 0x824   :  { %2794 = vrcp.f32 %v1704_v41 }
 0x825   :  { %2796 = vrcp.f32 %v1711_v43 }
 0x82e   :  { %v2795_v52 = vpop.eup %2794 }
 0x82f   :  { %v1715_v54 = vmul.f32 %v2795_v52, %v1714_v48  ;;  %v2797_v59 = vpop.eup %2796 }
 0x830   :  { %v1718_v58 = vsub.f32 1.0, %v2797_v59  ;;  %v1720_v42 = vmul.f32 %v2797_v59, %v1555_v25 }
 0x831   :  { %v1716_v6 = vadd.f32 %v1715_v54, %v3201_v63 }
 0x833   :  { %2798 = vtanh.f32 %v1716_v6 }
 0x83d   :  { %v2799_v60 = vpop.eup %2798 }
 0x83e   :  { %v1719_v9 = vmul.f32 %v2799_v60, %v1718_v58 }
 0x840   :  { %v1721_v62 = vadd.f32 %v1720_v42, %v1719_v9 }
 0x842   :  { %v1729_v0 = vmul.f32 %v1782_v47, %v1721_v62 }
 0x844   :  { %1730 = vadd.xlane.f32.xlu0 %v1729_v0 }
 0x8d1   :  { %v1731_v31 = vpop.xlane.xlu0 %1730 }
 0x8d2   :  { %v1739_v7 = vadd.f32 %v1783_v4, %v1731_v31 }
 0x8d4   :  { %1741 = vst.msk [vmem:[%s3469_s7] sm:$0xff] %vm1740_vm3, %v1739_v7 }

</bundles_post_ra>
